<compile_context>
chip_gen: v6e
topology: v6e:2x2x1
jax: 0.10.0
libtpu: 0.0.40
codegen_flags: <defaults>
</compile_context>

<pallas_src>
import functools

import jax
import jax.numpy as jnp
from jax.experimental import pallas as pl
from jax.experimental.pallas import tpu as pltpu


# ---------------------------------------------------------------------------
# Pallas kernel: fused 3-layer MLP   (TM, Din) -> 512 -> 256 -> 128 per step
# ---------------------------------------------------------------------------
def _fusion_mlp_kernel(x_ref, w1_ref, b1_ref, w2_ref, b2_ref, w3_ref, b3_ref,
                       o_ref):
    # x / w* are bf16; MXU accumulates in f32; the VPU epilogue (bias + ReLU)
    # stays in f32, and we only cast back to bf16 to feed the next matmul.
    x = x_ref[...]

    # Layer 1: Linear(Din, 512) + ReLU   (Dropout -> identity in eval)
    h1 = jnp.dot(x, w1_ref[...], preferred_element_type=jnp.float32)
    h1 = jnp.maximum(h1 + b1_ref[...], 0.0)

    # Layer 2: Linear(512, 256) + ReLU   (Dropout -> identity in eval)
    h2 = jnp.dot(h1.astype(jnp.bfloat16), w2_ref[...],
                 preferred_element_type=jnp.float32)
    h2 = jnp.maximum(h2 + b2_ref[...], 0.0)

    # Layer 3: Linear(256, 128)
    out = jnp.dot(h2.astype(jnp.bfloat16), w3_ref[...],
                  preferred_element_type=jnp.float32)
    o_ref[...] = (out + b3_ref[...]).astype(o_ref.dtype)


def fusion_mlp(x, w1, b1, w2, b2, w3, b3, *, tm=256, out_dtype=jnp.float32):
    """Run the fused MLP on x: (B, Din) -> (B, 128)."""
    B, Din = x.shape
    H1, H2, H3 = w1.shape[1], w2.shape[1], w3.shape[1]

    # Pad the batch to a multiple of the row tile so every grid step feeds a
    # full MXU tile; padded rows are sliced off after the call.
    n_steps = pl.cdiv(B, tm)
    B_pad = n_steps * tm
    if B_pad != B:
        x = jnp.pad(x, ((0, B_pad - B), (0, 0)))

    # bf16 activations for the MXU / halved x DMA (weights already bf16).
    x = x.astype(jnp.bfloat16)

    # VMEM budget: bf16 weights + f32 biases + double-buffered x/out tiles +
    # f32 intermediates (and their bf16 copies), with 2x headroom.
    weight_bytes = 2 * (Din * H1 + H1 * H2 + H2 * H3) + 4 * (H1 + H2 + H3)
    tile_bytes = 2 * tm * Din * 2 + 2 * tm * H3 * jnp.dtype(out_dtype).itemsize
    inter_bytes = tm * (H1 + H2) * (4 + 2)
    vmem_limit = int(min(64 << 20,
                         max(32 << 20,
                             2 * (weight_bytes + tile_bytes + inter_bytes))))

    # Weights / biases: full-array blocks at a constant block index, so their
    # HBM->VMEM DMA is not re-issued on every grid step.
    const = lambda shape: pl.BlockSpec(shape, lambda i: (0, 0))

    out = pl.pallas_call(
        _fusion_mlp_kernel,
        out_shape=jax.ShapeDtypeStruct((B_pad, H3), out_dtype),
        grid_spec=pltpu.PrefetchScalarGridSpec(
            num_scalar_prefetch=0,
            grid=(n_steps,),
            in_specs=[
                pl.BlockSpec((tm, Din), lambda i: (i, 0)),   # x: row-tiled
                const((Din, H1)), const((1, H1)),
                const((H1, H2)), const((1, H2)),
                const((H2, H3)), const((1, H3)),
            ],
            out_specs=pl.BlockSpec((tm, H3), lambda i: (i, 0)),
        ),
        compiler_params=pltpu.CompilerParams(
            dimension_semantics=("parallel",),   # megacore sharding on v7x
            vmem_limit_bytes=vmem_limit),
    )(x, w1, b1, w2, b2, w3, b3)

    return out[:B] if B_pad != B else out


# ---------------------------------------------------------------------------
# MultiModalFusion wrapper (glue: config handling, concat, param init)
# ---------------------------------------------------------------------------
class MultiModalFusionPallas:
    def __init__(self, modality_configs, key):
        self.configs = modality_configs
        total_input_dim = sum(
            cfg["input_dim"] for cfg in modality_configs.values()
            if cfg["enabled"])

        dims = [(total_input_dim, 512), (512, 256), (256, 128)]
        keys = jax.random.split(key, 2 * len(dims))
        self.params = []
        for i, (din, dout) in enumerate(dims):
            # deterministic init, roughly matching nn.Linear's uniform scale
            bound = float(din) ** -0.5
            w = jax.random.uniform(keys[2 * i], (din, dout),
                                   minval=-bound, maxval=bound,
                                   dtype=jnp.float32)
            b = jax.random.uniform(keys[2 * i + 1], (1, dout),
                                   minval=-bound, maxval=bound,
                                   dtype=jnp.float32)
            # Weights live in HBM as bf16 (halves weight DMA; f32 accumulation
            # in the kernel preserves precision). Biases stay f32 (epilogue).
            self.params.extend([w.astype(jnp.bfloat16), b])

    @functools.partial(jax.jit, static_argnums=0)
    def _run(self, x, *params):
        return fusion_mlp(x, *params)

    def __call__(self, features):
        concat = []
        for modality, cfg in self.configs.items():
            if cfg["enabled"] and modality in features:
                concat.append(features[modality])
        if not concat:
            raise ValueError("No features provided for enabled modalities")
        x = jnp.concatenate(concat, axis=-1)
        return self._run(x, *self.params)


# ---------------------------------------------------------------------------
# Demo / smoke test
# ---------------------------------------------------------------------------
if __name__ == "__main__":
    key = jax.random.PRNGKey(0)
    k_param, k_text, k_vision = jax.random.split(key, 3)

    # Two enabled modalities (total_input_dim = 48 + 80 = 128), one disabled.
    configs = {
        "text":   {"enabled": True,  "model_name": "txt",   "input_dim": 48,
                   "output_dim": 128},
        "vision": {"enabled": True,  "model_name": "vit",   "input_dim": 80,
                   "output_dim": 128},
        "audio":  {"enabled": False, "model_name": "wav",   "input_dim": 64,
                   "output_dim": 128},
    }

    B = 8
    features = {
        "text":   jax.random.normal(k_text,   (B, 48), dtype=jnp.float32),
        "vision": jax.random.normal(k_vision, (B, 80), dtype=jnp.float32),
    }

    model = MultiModalFusionPallas(configs, k_param)
    out = model(features)
    out = jax.block_until_ready(out)

    assert out.shape == (B, 128), out.shape
    assert jnp.isfinite(out).all()

    # Reference check in plain JAX: same math as the kernel
    # (bf16 matmul operands, f32 accumulation, f32 epilogue).
    w1, b1, w2, b2, w3, b3 = model.params
    x = jnp.concatenate([features["text"], features["vision"]], axis=-1)

    def mm(a, w):
        return jnp.dot(a.astype(jnp.bfloat16), w,
                       preferred_element_type=jnp.float32)

    ref = jnp.maximum(mm(x, w1) + b1, 0.0)
    ref = jnp.maximum(mm(ref, w2) + b2, 0.0)
    ref = mm(ref, w3) + b3
    assert jnp.allclose(out, ref, atol=1e-2, rtol=1e-2), (
        float(jnp.max(jnp.abs(out - ref))))

    print("KERNEL_OK")
</pallas_src>

<mosaic_0001>
module attributes {stable_mosaic.version = 11 : i64} {
  func.func @_fusion_mlp_kernel(%arg0: i32, %arg1: memref<256x128xbf16, #tpu.memory_space<vmem>>, %arg2: memref<128x512xbf16, #tpu.memory_space<vmem>>, %arg3: memref<1x512xf32, #tpu.memory_space<vmem>>, %arg4: memref<512x256xbf16, #tpu.memory_space<vmem>>, %arg5: memref<1x256xf32, #tpu.memory_space<vmem>>, %arg6: memref<256x128xbf16, #tpu.memory_space<vmem>>, %arg7: memref<1x128xf32, #tpu.memory_space<vmem>>, %arg8: memref<256x128xf32, #tpu.memory_space<vmem>>) attributes {dimension_semantics = [#tpu.dimension_semantics<parallel>], iteration_bounds = array<i64: 1>, scalar_prefetch = 0 : i64, scratch_operands = 0 : i64, tpu.core_type = #tpu.core_type<tc>, window_params = [{transform_indices = @transform_0, window_bounds = array<i64: 256, 128>}, {pipeline_mode = #tpu.pipeline_mode<synchronous>, transform_indices = @transform_1, window_bounds = array<i64: 128, 512>}, {pipeline_mode = #tpu.pipeline_mode<synchronous>, transform_indices = @transform_2, window_bounds = array<i64: 1, 512>}, {pipeline_mode = #tpu.pipeline_mode<synchronous>, transform_indices = @transform_3, window_bounds = array<i64: 512, 256>}, {pipeline_mode = #tpu.pipeline_mode<synchronous>, transform_indices = @transform_4, window_bounds = array<i64: 1, 256>}, {pipeline_mode = #tpu.pipeline_mode<synchronous>, transform_indices = @transform_5, window_bounds = array<i64: 256, 128>}, {pipeline_mode = #tpu.pipeline_mode<synchronous>, transform_indices = @transform_6, window_bounds = array<i64: 1, 128>}, {transform_indices = @transform_7, window_bounds = array<i64: 256, 128>}]} {
    %c0 = arith.constant 0 : index
    %c0_0 = arith.constant 0 : index
    %0 = vector.load %arg1[%c0, %c0_0] : memref<256x128xbf16, #tpu.memory_space<vmem>>, vector<256x128xbf16>
    %c0_1 = arith.constant 0 : index
    %c0_2 = arith.constant 0 : index
    %1 = vector.load %arg2[%c0_1, %c0_2] : memref<128x512xbf16, #tpu.memory_space<vmem>>, vector<128x512xbf16>
    %cst = arith.constant dense<0.000000e+00> : vector<256x512xf32>
    %2 = tpu.matmul %0, %1, %cst {dimension_numbers = #tpu.dot_dimension_numbers<[1], [0], [0], [1], [0, 0, 1, 1], [], []>} : vector<256x128xbf16>, vector<128x512xbf16>, vector<256x512xf32> -> vector<256x512xf32>
    %c0_3 = arith.constant 0 : index
    %c0_4 = arith.constant 0 : index
    %3 = vector.load %arg3[%c0_3, %c0_4] : memref<1x512xf32, #tpu.memory_space<vmem>>, vector<1x512xf32>
    %4 = vector.broadcast %3 : vector<1x512xf32> to vector<256x512xf32>
    %5 = arith.addf %2, %4 : vector<256x512xf32>
    %cst_5 = arith.constant 0.000000e+00 : f32
    %6 = vector.broadcast %cst_5 : f32 to vector<256x512xf32>
    %7 = arith.maximumf %5, %6 : vector<256x512xf32>
    %8 = arith.truncf %7 : vector<256x512xf32> to vector<256x512xbf16>
    %c0_6 = arith.constant 0 : index
    %c0_7 = arith.constant 0 : index
    %9 = vector.load %arg4[%c0_6, %c0_7] : memref<512x256xbf16, #tpu.memory_space<vmem>>, vector<512x256xbf16>
    %cst_8 = arith.constant dense<0.000000e+00> : vector<256x256xf32>
    %10 = tpu.matmul %8, %9, %cst_8 {dimension_numbers = #tpu.dot_dimension_numbers<[1], [0], [0], [1], [0, 0, 1, 1], [], []>} : vector<256x512xbf16>, vector<512x256xbf16>, vector<256x256xf32> -> vector<256x256xf32>
    %c0_9 = arith.constant 0 : index
    %c0_10 = arith.constant 0 : index
    %11 = vector.load %arg5[%c0_9, %c0_10] : memref<1x256xf32, #tpu.memory_space<vmem>>, vector<1x256xf32>
    %12 = vector.broadcast %11 : vector<1x256xf32> to vector<256x256xf32>
    %13 = arith.addf %10, %12 : vector<256x256xf32>
    %cst_11 = arith.constant 0.000000e+00 : f32
    %14 = vector.broadcast %cst_11 : f32 to vector<256x256xf32>
    %15 = arith.maximumf %13, %14 : vector<256x256xf32>
    %16 = arith.truncf %15 : vector<256x256xf32> to vector<256x256xbf16>
    %c0_12 = arith.constant 0 : index
    %c0_13 = arith.constant 0 : index
    %17 = vector.load %arg6[%c0_12, %c0_13] : memref<256x128xbf16, #tpu.memory_space<vmem>>, vector<256x128xbf16>
    %cst_14 = arith.constant dense<0.000000e+00> : vector<256x128xf32>
    %18 = tpu.matmul %16, %17, %cst_14 {dimension_numbers = #tpu.dot_dimension_numbers<[1], [0], [0], [1], [0, 0, 1, 1], [], []>} : vector<256x256xbf16>, vector<256x128xbf16>, vector<256x128xf32> -> vector<256x128xf32>
    %c0_15 = arith.constant 0 : index
    %c0_16 = arith.constant 0 : index
    %19 = vector.load %arg7[%c0_15, %c0_16] : memref<1x128xf32, #tpu.memory_space<vmem>>, vector<1x128xf32>
    %20 = vector.broadcast %19 : vector<1x128xf32> to vector<256x128xf32>
    %21 = arith.addf %18, %20 : vector<256x128xf32>
    %c0_17 = arith.constant 0 : index
    %c0_18 = arith.constant 0 : index
    %22 = vector.load %arg8[%c0_17, %c0_18] : memref<256x128xf32, #tpu.memory_space<vmem>>, vector<256x128xf32>
    tpu.vector_store %arg8[%c0_17, %c0_18], %21 {strides = array<i32>} : memref<256x128xf32, #tpu.memory_space<vmem>>, vector<256x128xf32>,
    return
  }
  func.func @transform_0(%arg0: i32) -> (i32, i32) {
    %c0_i32 = arith.constant 0 : i32
    %c0_i32_0 = arith.constant 0 : i32
    return %arg0, %c0_i32 : i32, i32
  }
  func.func @transform_1(%arg0: i32) -> (i32, i32) {
    %c0_i32 = arith.constant 0 : i32
    %c0_i32_0 = arith.constant 0 : i32
    %c0_i32_1 = arith.constant 0 : i32
    return %c0_i32, %c0_i32_0 : i32, i32
  }
  func.func @transform_2(%arg0: i32) -> (i32, i32) {
    %c0_i32 = arith.constant 0 : i32
    %c0_i32_0 = arith.constant 0 : i32
    %c0_i32_1 = arith.constant 0 : i32
    return %c0_i32, %c0_i32_0 : i32, i32
  }
  func.func @transform_3(%arg0: i32) -> (i32, i32) {
    %c0_i32 = arith.constant 0 : i32
    %c0_i32_0 = arith.constant 0 : i32
    %c0_i32_1 = arith.constant 0 : i32
    return %c0_i32, %c0_i32_0 : i32, i32
  }
  func.func @transform_4(%arg0: i32) -> (i32, i32) {
    %c0_i32 = arith.constant 0 : i32
    %c0_i32_0 = arith.constant 0 : i32
    %c0_i32_1 = arith.constant 0 : i32
    return %c0_i32, %c0_i32_0 : i32, i32
  }
  func.func @transform_5(%arg0: i32) -> (i32, i32) {
    %c0_i32 = arith.constant 0 : i32
    %c0_i32_0 = arith.constant 0 : i32
    %c0_i32_1 = arith.constant 0 : i32
    return %c0_i32, %c0_i32_0 : i32, i32
  }
  func.func @transform_6(%arg0: i32) -> (i32, i32) {
    %c0_i32 = arith.constant 0 : i32
    %c0_i32_0 = arith.constant 0 : i32
    %c0_i32_1 = arith.constant 0 : i32
    return %c0_i32, %c0_i32_0 : i32, i32
  }
  func.func @transform_7(%arg0: i32) -> (i32, i32) {
    %c0_i32 = arith.constant 0 : i32
    %c0_i32_0 = arith.constant 0 : i32
    return %arg0, %c0_i32 : i32, i32
  }
}

</mosaic_0001>

<bundles_post_ra>
// kernel: _run.1
= control target key start
LH: loop header
LB: loop body
LE: loop exit
PB: predicated region body
PF: predicated region fallthrough
CT: control target
= control target key end

     0   :  { %12 = vsyncpa [#allocation3], 0  ;;  %s3489_s0 = inlined_call_operand.vmem [shape: bf16[256,128], index: 0, kind: input, shape index: {}]   ;;  %s3490_s1 = inlined_call_operand.hbm [shape: bf16[128,512], index: 1, kind: input, shape index: {}]   ;;  %s3491_s2 = inlined_call_operand.vmem [shape: f32[1,512], index: 2, kind: input, shape index: {}]   ;;  %s3492_s3 = inlined_call_operand.hbm [shape: bf16[512,256], index: 3, kind: input, shape index: {}]   ;;  %s3493_s4 = inlined_call_operand.vmem [shape: f32[1,256], index: 4, kind: input, shape index: {}]   ;;  %s3494_s5 = inlined_call_operand.vmem [shape: bf16[256,128], index: 5, kind: input, shape index: {}]   ;;  %s3495_s6 = inlined_call_operand.vmem [shape: f32[1,128], index: 6, kind: input, shape index: {}]   ;;  %s3496_s7 = inlined_call_operand.vmem [shape: f32[256,128], index: 7, kind: output, shape index: {}]  }
   0x1   :  { %13 = vsyncpa [#allocation5], 0  ;;  %s2671_s24 = smov [#allocation2]  }
   0x2   :  { %s21_s25 = sshll.u32 %s2671_s24, 4  ;;  %s22_s25 = int_to_ptr.vmem [resolvable:$true] %s21_s25 }
   0x3   :  { %s2635_s26 = scalar_lea.vmem %s22_s25, 4096  ;;  %p2640_p1 = scmp.lt.s32.totalorder %s22_s25, %s22_s25 }
   0x4   :  { %p2636_p0 = scmp.ne.s32.totalorder %s22_s25, %s2635_s26  ;;  %p2641_p2 = scmp.lt.s32.totalorder %s2635_s26, %s2635_s26 }
   0x6   :  { %p2642_p3 = por %p2641_p2, %p2640_p1 }
   0x8   :  { %p2643_p4 = pnand %p2642_p3, %p2636_p0 }
   0xa   :  { %2646 = shalt.err (!%p2643_p4)
}
   0xb   :  { %s2672_s27 = smov 256   ;;  %s2673_s28 = smov 16  }
   0xc   :  { %27 = dma.hbm_to_vmem [thread:$0]  %s3490_s1, 4096, %s22_s25, [#allocation3], %s2672_s27, %s2672_s27, %s2673_s28  }
   0xd   :  { %s2674_s8 = smov [#allocation4]  }
   0xe   :  { %s35_s9 = sshll.u32 %s2674_s8, 4  ;;  %s36_s9 = int_to_ptr.vmem [resolvable:$true] %s35_s9 }
   0xf   :  { %s2655_s10 = scalar_lea.vmem %s36_s9, 8192  ;;  %p2660_p6 = scmp.lt.s32.totalorder %s36_s9, %s36_s9 }
  0x10   :  { %p2656_p5 = scmp.ne.s32.totalorder %s36_s9, %s2655_s10  ;;  %p2661_p7 = scmp.lt.s32.totalorder %s2655_s10, %s2655_s10 }
  0x12   :  { %p2662_p8 = por %p2661_p7, %p2660_p6 }
  0x14   :  { %p2663_p9 = pnand %p2662_p8, %p2656_p5 }
  0x16   :  { %2666 = shalt.err (!%p2663_p9)
}
  0x17   :  { %s2675_s11 = smov 128   ;;  %s2676_s12 = smov 8  }
  0x18   :  { %41 = dma.hbm_to_vmem [thread:$0]  %s3492_s3, 8192, %s36_s9, [#allocation5], %s2675_s11, %s2675_s11, %s2676_s12  }
  0x19   :  { %2667 = dma.done.wait [#allocation3], 4096  }
  0x1a   :  { %2668 = vsyncadd [#allocation3], 4294963200 }
  0x1b   :  { %2669 = dma.done.wait [#allocation5], 8192  }
  0x1c   :  { %2670 = vsyncadd [#allocation5], 4294959104  ;;  %v2677_v0 = vmov 0   ;;  %v2451_v1 = vld [vmem:[#allocation2 + $0xe4] ss:$16 sps:$4 sm:$0xff]   ;;  %v2743_v23 = vld [vmem:[%s3489_s0 + $0x8] sm:$0xff]  }
  0x1d   :  { %429 = vmatprep.mubr.bf16.mxu0 %v2677_v0  ;;  %509 = vmatprep.mubr.bf16.mxu1 %v2677_v0  ;;  %v2453_v2 = vld [vmem:[#allocation2 + $0xe0] ss:$16 sps:$4 sm:$0xff]   ;;  %v2454_v3 = vld [vmem:[#allocation2 + $0xc4] ss:$16 sps:$4 sm:$0xff]   ;;  %v2479_v17 = vld [vmem:[#allocation2 + $0xec] ss:$16 sps:$4 sm:$0xff]  }
  0x1e   :  { %397 = vmatprep.subr.bf16.mxu0 %v2451_v1  ;;  %2428 = vmatprep.subr.bf16.mxu1 %v2451_v1  ;;  %v2456_v4 = vld [vmem:[#allocation2 + $0xc0] ss:$16 sps:$4 sm:$0xff]   ;;  %v2457_v5 = vld [vmem:[#allocation2 + $0xa4] ss:$16 sps:$4 sm:$0xff]   ;;  %v2477_v20 = vld [vmem:[#allocation2 + $0xe8] ss:$16 sps:$4 sm:$0xff]  }
  0x1f   :  { %398 = vmatpush1.bf16.msra.mxu0 %v2453_v2  ;;  %2436 = vmatpush1.bf16.msra.mxu1 %v2453_v2  ;;  %v2459_v6 = vld [vmem:[#allocation2 + $0xa0] ss:$16 sps:$4 sm:$0xff]   ;;  %v2460_v7 = vld [vmem:[#allocation2 + $0x84] ss:$16 sps:$4 sm:$0xff]   ;;  %v2484_v21 = vld [vmem:[#allocation2 + $0xcc] ss:$16 sps:$4 sm:$0xff]  }
  0x20   :  { %399 = vmatprep.subr.bf16.mxu0 %v2454_v3  ;;  %2429 = vmatprep.subr.bf16.mxu1 %v2454_v3  ;;  %v2462_v8 = vld [vmem:[#allocation2 + $0x80] ss:$16 sps:$4 sm:$0xff]   ;;  %v2463_v9 = vld [vmem:[#allocation2 + $0x64] ss:$16 sps:$4 sm:$0xff]   ;;  %v2482_v22 = vld [vmem:[#allocation2 + $0xc8] ss:$16 sps:$4 sm:$0xff]  }
  0x21   :  { %v2465_v10 = vld [vmem:[#allocation2 + $0x60] ss:$16 sps:$4 sm:$0xff]   ;;  %v2466_v11 = vld [vmem:[#allocation2 + $0x44] ss:$16 sps:$4 sm:$0xff]   ;;  %v2489_v24 = vld [vmem:[#allocation2 + $0xac] ss:$16 sps:$4 sm:$0xff]  }
  0x22   :  { %v2468_v12 = vld [vmem:[#allocation2 + $0x40] ss:$16 sps:$4 sm:$0xff]   ;;  %v2469_v13 = vld [vmem:[#allocation2 + $0x24] ss:$16 sps:$4 sm:$0xff]   ;;  %v2748_v25 = vld [vmem:[%s3489_s0 + $0x48] sm:$0xff]  }
  0x23   :  { %400 = vmatpush1.bf16.msra.mxu0 %v2456_v4  ;;  %2437 = vmatpush1.bf16.msra.mxu1 %v2456_v4  ;;  %v2471_v14 = vld [vmem:[#allocation2 + $0x20] ss:$16 sps:$4 sm:$0xff]   ;;  %v2472_v15 = vld [vmem:[#allocation2 + $0x4] ss:$16 sps:$4 sm:$0xff]   ;;  %v2487_v26 = vld [vmem:[#allocation2 + $0xa8] ss:$16 sps:$4 sm:$0xff]  }
  0x24   :  { %401 = vmatprep.subr.bf16.mxu0 %v2457_v5  ;;  %2430 = vmatprep.subr.bf16.mxu1 %v2457_v5  ;;  %v2474_v16 = vld [vmem:[#allocation2] ss:$16 sps:$4 sm:$0xff]   ;;  %v2494_v27 = vld [vmem:[#allocation2 + $0x8c] ss:$16 sps:$4 sm:$0xff]   ;;  %v2492_v28 = vld [vmem:[#allocation2 + $0x88] ss:$16 sps:$4 sm:$0xff]  }
  0x25   :  { %v2729_v18 = vld [vmem:[%s3489_s0] sm:$0xff]   ;;  %v2515_v29 = vld [vmem:[#allocation4 + $0x70] ss:$8 sps:$4 sm:$0xff]   ;;  %v2517_v30 = vld [vmem:[#allocation4 + $0x74] ss:$8 sps:$4 sm:$0xff]  }
  0x26   :  { %v2734_v19 = vld [vmem:[%s3489_s0 + $0x40] sm:$0xff]   ;;  %v2499_v31 = vld [vmem:[#allocation2 + $0x6c] ss:$16 sps:$4 sm:$0xff]   ;;  %v2757_v32 = vld [vmem:[%s3489_s0 + $0x10] sm:$0xff]  }
  0x27   :  { %402 = vmatpush1.bf16.msra.mxu0 %v2459_v6  ;;  %2438 = vmatpush1.bf16.msra.mxu1 %v2459_v6  ;;  %v2762_v33 = vld [vmem:[%s3489_s0 + $0x50] sm:$0xff]   ;;  %v2497_v34 = vld [vmem:[#allocation2 + $0x68] ss:$16 sps:$4 sm:$0xff]   ;;  %v2504_v35 = vld [vmem:[#allocation2 + $0x4c] ss:$16 sps:$4 sm:$0xff]  }
  0x28   :  { %403 = vmatprep.subr.bf16.mxu0 %v2460_v7  ;;  %2431 = vmatprep.subr.bf16.mxu1 %v2460_v7  ;;  %v2502_v36 = vld [vmem:[#allocation2 + $0x48] ss:$16 sps:$4 sm:$0xff]   ;;  %v2523_v38 = vld [vmem:[#allocation4 + $0x64] ss:$8 sps:$4 sm:$0xff]   ;;  %v2526_v41 = vld [vmem:[#allocation4 + $0x54] ss:$8 sps:$4 sm:$0xff]  }
  0x29   :  { %v2521_v37 = vld [vmem:[#allocation4 + $0x60] ss:$8 sps:$4 sm:$0xff]   ;;  %v2509_v39 = vld [vmem:[#allocation2 + $0x2c] ss:$16 sps:$4 sm:$0xff]   ;;  %v2524_v40 = vld [vmem:[#allocation4 + $0x50] ss:$8 sps:$4 sm:$0xff]  }
  0x2a   :  { %v2771_v42 = vld [vmem:[%s3489_s0 + $0x18] sm:$0xff]   ;;  %v2530_v47 = vld [vmem:[#allocation4 + $0x40] ss:$8 sps:$4 sm:$0xff]   ;;  %v2532_v48 = vld [vmem:[#allocation4 + $0x44] ss:$8 sps:$4 sm:$0xff]  }
  0x2b   :  { %404 = vmatpush1.bf16.msra.mxu0 %v2462_v8  ;;  %2439 = vmatpush1.bf16.msra.mxu1 %v2462_v8  ;;  %v2776_v43 = vld [vmem:[%s3489_s0 + $0x58] sm:$0xff]   ;;  %v2785_v52 = vld [vmem:[%s3489_s0 + $0x20] sm:$0xff]   ;;  %v2799_v58 = vld [vmem:[%s3489_s0 + $0x28] sm:$0xff]  }
  0x2c   :  { %405 = vmatprep.subr.bf16.mxu0 %v2463_v9  ;;  %2432 = vmatprep.subr.bf16.mxu1 %v2463_v9  ;;  %v2507_v44 = vld [vmem:[#allocation2 + $0x28] ss:$16 sps:$4 sm:$0xff]   ;;  %v2514_v45 = vld [vmem:[#allocation2 + $0xc] ss:$16 sps:$4 sm:$0xff]   ;;  %v2790_v53 = vld [vmem:[%s3489_s0 + $0x60] sm:$0xff]  }
  0x2d   :  { %v2512_v46 = vld [vmem:[#allocation2 + $0x8] ss:$16 sps:$4 sm:$0xff]   ;;  %v2520_v49 = vld [vmem:[#allocation4 + $0x174] ss:$8 sps:$4 sm:$0xff]   ;;  %v2541_v55 = vld [vmem:[#allocation4 + $0x24] ss:$8 sps:$4 sm:$0xff]  }
  0x2e   :  { %v2533_v50 = vld [vmem:[#allocation4 + $0x30] ss:$8 sps:$4 sm:$0xff]   ;;  %v2535_v51 = vld [vmem:[#allocation4 + $0x34] ss:$8 sps:$4 sm:$0xff]   ;;  %v2539_v54 = vld [vmem:[#allocation4 + $0x20] ss:$8 sps:$4 sm:$0xff]  }
  0x2f   :  { %406 = vmatpush1.bf16.msra.mxu0 %v2465_v10  ;;  %2440 = vmatpush1.bf16.msra.mxu1 %v2465_v10  ;;  %v2542_v56 = vld [vmem:[#allocation4 + $0x10] ss:$8 sps:$4 sm:$0xff]   ;;  %v2544_v57 = vld [vmem:[#allocation4 + $0x14] ss:$8 sps:$4 sm:$0xff]   ;;  %v2804_v59 = vld [vmem:[%s3489_s0 + $0x68] sm:$0xff]  }
  0x30   :  { %407 = vmatprep.subr.bf16.mxu0 %v2466_v11  ;;  %2433 = vmatprep.subr.bf16.mxu1 %v2466_v11  ;;  %v2548_v60 = vld [vmem:[#allocation4] ss:$8 sps:$4 sm:$0xff]   ;;  %v2550_v61 = vld [vmem:[#allocation4 + $0x4] ss:$8 sps:$4 sm:$0xff]   ;;  %v2551_v62 = vld [vmem:[#allocation4 + $0xf0] ss:$8 sps:$4 sm:$0xff]  }
  0x31   :  { %v2553_v63 = vld [vmem:[#allocation4 + $0xf4] ss:$8 sps:$4 sm:$0xff]   ;;  %v2557_v3 = vld [vmem:[#allocation4 + $0xe0] ss:$8 sps:$4 sm:$0xff]   ;;  %v2559_v4 = vld [vmem:[#allocation4 + $0xe4] ss:$8 sps:$4 sm:$0xff]  }
  0x32   :  { %v2813_v1 = vld [vmem:[%s3489_s0 + $0x30] sm:$0xff]   ;;  %v2827_v7 = vld [vmem:[%s3489_s0 + $0x38] sm:$0xff]   ;;  %v2566_v9 = vld [vmem:[#allocation4 + $0xc0] ss:$8 sps:$4 sm:$0xff]  }
  0x33   :  { %408 = vmatpush1.bf16.msra.mxu0 %v2468_v12  ;;  %2441 = vmatpush1.bf16.msra.mxu1 %v2468_v12  ;;  %v2818_v2 = vld [vmem:[%s3489_s0 + $0x70] sm:$0xff]   ;;  %v2832_v8 = vld [vmem:[%s3489_s0 + $0x78] sm:$0xff]   ;;  %v2568_v10 = vld [vmem:[#allocation4 + $0xc4] ss:$8 sps:$4 sm:$0xff]  }
  0x34   :  { %409 = vmatprep.subr.bf16.mxu0 %v2469_v13  ;;  %2434 = vmatprep.subr.bf16.mxu1 %v2469_v13  ;;  %v2562_v5 = vld [vmem:[#allocation4 + $0xd4] ss:$8 sps:$4 sm:$0xff]   ;;  %v2560_v6 = vld [vmem:[#allocation4 + $0xd0] ss:$8 sps:$4 sm:$0xff]  }
  0x35   :  { %v2571_v11 = vld [vmem:[#allocation4 + $0xb4] ss:$8 sps:$4 sm:$0xff]   ;;  %v2569_v12 = vld [vmem:[#allocation4 + $0xb0] ss:$8 sps:$4 sm:$0xff]  }
  0x36   :  { %v2518_v13 = vld [vmem:[#allocation4 + $0x170] ss:$8 sps:$4 sm:$0xff]  }
  0x37   :  { %410 = vmatpush1.bf16.msra.mxu0 %v2471_v14  ;;  %2442 = vmatpush1.bf16.msra.mxu1 %v2471_v14  ;;  %v2529_v14 = vld [vmem:[#allocation4 + $0x164] ss:$8 sps:$4 sm:$0xff]  }
  0x38   :  { %411 = vmatprep.subr.bf16.mxu0 %v2472_v15  ;;  %2435 = vmatprep.subr.bf16.mxu1 %v2472_v15  ;;  %v2577_v15 = vld [vmem:[#allocation4 + $0xa4] ss:$8 sps:$4 sm:$0xff]  }
  0x3b   :  { %412 = vmatpush1.bf16.msra.mxu0 %v2474_v16  ;;  %2443 = vmatpush1.bf16.msra.mxu1 %v2474_v16  ;;  %v2527_v16 = vld [vmem:[#allocation4 + $0x160] ss:$8 sps:$4 sm:$0xff]  }
  0x3c   :  { %590 = vmatprep.subr.bf16.mxu1 %v2479_v17  ;;  %1371 = vmatprep.subr.bf16.mxu0 %v2517_v30  ;;  %v2575_v17 = vld [vmem:[#allocation4 + $0xa0] ss:$8 sps:$4 sm:$0xff]   ;;  %v2554_v30 = vld [vmem:[#allocation4 + $0x130] ss:$8 sps:$4 sm:$0xff]  }
  0x3e   :  { %430 = vmatmul.mubr.bf16.vlgmr.msra.gmra.mxu0 %v2729_v18  ;;  %510 = vmatmul.mubr.bf16.vlgmr.msra.gmra.mxu1 %v2734_v19 }
  0x3f   :  { %591 = vmatpush1.bf16.msra.mxu1 %v2477_v20  ;;  %439 = vmatprep.mubr.bf16.mxu0 %v2677_v0  ;;  %v2538_v20 = vld [vmem:[#allocation4 + $0x154] ss:$8 sps:$4 sm:$0xff]  }
  0x40   :  { %519 = vmatprep.mubr.bf16.mxu1 %v2677_v0  ;;  %592 = vmatprep.subr.bf16.mxu1 %v2484_v21  ;;  %v2580_v21 = vld [vmem:[#allocation4 + $0x94] ss:$8 sps:$4 sm:$0xff]  }
  0x41   :  { %1372 = vmatpush1.bf16.msra.mxu0 %v2515_v29  ;;  %v2584_v29 = vld [vmem:[#allocation4 + $0x80] ss:$8 sps:$4 sm:$0xff]  }
  0x42   :  { %1373 = vmatprep.subr.bf16.mxu0 %v2523_v38  ;;  %v2589_v38 = vld [vmem:[#allocation4 + $0x1f4] ss:$8 sps:$4 sm:$0xff]  }
  0x43   :  { %593 = vmatpush1.bf16.msra.mxu1 %v2482_v22  ;;  %v2536_v22 = vld [vmem:[#allocation4 + $0x150] ss:$8 sps:$4 sm:$0xff]  }
  0x44   :  { %594 = vmatprep.subr.bf16.mxu1 %v2489_v24  ;;  %v2578_v24 = vld [vmem:[#allocation4 + $0x90] ss:$8 sps:$4 sm:$0xff]  }
  0x45   :  { %1374 = vmatpush1.bf16.msra.mxu0 %v2521_v37  ;;  %v2581_v37 = vld [vmem:[#allocation4 + $0x100] ss:$8 sps:$4 sm:$0xff]  }
  0x46   :  { %440 = vmatmul.mubr.bf16.gmra.mxu0 %v2743_v23  ;;  %520 = vmatmul.mubr.bf16.gmra.mxu1 %v2748_v25 }
  0x47   :  { %449 = vmatprep.mubr.bf16.mxu0 %v2677_v0  ;;  %529 = vmatprep.mubr.bf16.mxu1 %v2677_v0 }
  0x48   :  { %595 = vmatpush1.bf16.msra.mxu1 %v2487_v26  ;;  %1375 = vmatprep.subr.bf16.mxu0 %v2526_v41  ;;  %v2547_v26 = vld [vmem:[#allocation4 + $0x144] ss:$8 sps:$4 sm:$0xff]   ;;  %v2595_v41 = vld [vmem:[#allocation4 + $0x1d4] ss:$8 sps:$4 sm:$0xff]  }
  0x49   :  { %596 = vmatprep.subr.bf16.mxu1 %v2494_v27  ;;  %1376 = vmatpush1.bf16.msra.mxu0 %v2524_v40  ;;  %v2586_v27 = vld [vmem:[#allocation4 + $0x84] ss:$8 sps:$4 sm:$0xff]   ;;  %v2590_v40 = vld [vmem:[#allocation4 + $0x1e0] ss:$8 sps:$4 sm:$0xff]  }
  0x4a   :  { %1377 = vmatprep.subr.bf16.mxu0 %v2532_v48  ;;  %v2602_v48 = vld [vmem:[#allocation4 + $0x1a0] ss:$8 sps:$4 sm:$0xff]  }
  0x4c   :  { %597 = vmatpush1.bf16.msra.mxu1 %v2492_v28  ;;  %v2556_v28 = vld [vmem:[#allocation4 + $0x134] ss:$8 sps:$4 sm:$0xff]  }
  0x4d   :  { %598 = vmatprep.subr.bf16.mxu1 %v2499_v31  ;;  %1378 = vmatpush1.bf16.msra.mxu0 %v2530_v47  ;;  %v2565_v31 = vld [vmem:[#allocation4 + $0x124] ss:$8 sps:$4 sm:$0xff]   ;;  %v2601_v47 = vld [vmem:[#allocation4 + $0x1b4] ss:$8 sps:$4 sm:$0xff]  }
  0x4e   :  { %450 = vmatmul.mubr.bf16.gmra.mxu0 %v2757_v32  ;;  %530 = vmatmul.mubr.bf16.gmra.mxu1 %v2762_v33 }
  0x4f   :  { %459 = vmatprep.mubr.bf16.mxu0 %v2677_v0  ;;  %539 = vmatprep.mubr.bf16.mxu1 %v2677_v0 }
  0x50   :  { %599 = vmatpush1.bf16.msra.mxu1 %v2497_v34  ;;  %1379 = vmatprep.subr.bf16.mxu0 %v2535_v51  ;;  %v2574_v34 = vld [vmem:[#allocation4 + $0x114] ss:$8 sps:$4 sm:$0xff]  }
  0x51   :  { %600 = vmatprep.subr.bf16.mxu1 %v2504_v35  ;;  %1380 = vmatpush1.bf16.msra.mxu0 %v2533_v50  ;;  %v2572_v35 = vld [vmem:[#allocation4 + $0x110] ss:$8 sps:$4 sm:$0xff]   ;;  %v2607_v51 = vld [vmem:[#allocation4 + $0x194] ss:$8 sps:$4 sm:$0xff]  }
  0x52   :  { %1381 = vmatprep.subr.bf16.mxu0 %v2541_v55  ;;  %v2605_v50 = vld [vmem:[#allocation4 + $0x190] ss:$8 sps:$4 sm:$0xff]  }
  0x54   :  { %601 = vmatpush1.bf16.msra.mxu1 %v2502_v36  ;;  %v2583_v36 = vld [vmem:[#allocation4 + $0x104] ss:$8 sps:$4 sm:$0xff]  }
  0x55   :  { %602 = vmatprep.subr.bf16.mxu1 %v2509_v39  ;;  %1382 = vmatpush1.bf16.msra.mxu0 %v2539_v54  ;;  %v2592_v39 = vld [vmem:[#allocation4 + $0x1e4] ss:$8 sps:$4 sm:$0xff]  }
  0x56   :  { %460 = vmatmul.mubr.bf16.gmra.mxu0 %v2771_v42  ;;  %540 = vmatmul.mubr.bf16.gmra.mxu1 %v2776_v43  ;;  %v2610_v54 = vld [vmem:[#allocation4 + $0x184] ss:$8 sps:$4 sm:$0xff]  }
  0x57   :  { %469 = vmatprep.mubr.bf16.mxu0 %v2677_v0  ;;  %549 = vmatprep.mubr.bf16.mxu1 %v2677_v0 }
  0x58   :  { %603 = vmatpush1.bf16.msra.mxu1 %v2507_v44  ;;  %1383 = vmatprep.subr.bf16.mxu0 %v2544_v57  ;;  %v2596_v44 = vld [vmem:[#allocation4 + $0x1c0] ss:$8 sps:$4 sm:$0xff]  }
  0x59   :  { %604 = vmatprep.subr.bf16.mxu1 %v2514_v45  ;;  %1384 = vmatpush1.bf16.msra.mxu0 %v2542_v56  ;;  %v2598_v45 = vld [vmem:[#allocation4 + $0x1c4] ss:$8 sps:$4 sm:$0xff]  }
  0x5a   :  { %1385 = vmatprep.subr.bf16.mxu0 %v2550_v61 }
  0x5c   :  { %605 = vmatpush1.bf16.msra.mxu1 %v2512_v46  ;;  %v2599_v46 = vld [vmem:[#allocation4 + $0x1b0] ss:$8 sps:$4 sm:$0xff]  }
  0x5d   :  { %1564 = vmatprep.subr.bf16.mxu1 %v2520_v49  ;;  %1386 = vmatpush1.bf16.msra.mxu0 %v2548_v60  ;;  %v2604_v49 = vld [vmem:[#allocation4 + $0x1a4] ss:$8 sps:$4 sm:$0xff]  }
  0x5e   :  { %470 = vmatmul.mubr.bf16.gmra.mxu0 %v2785_v52  ;;  %550 = vmatmul.mubr.bf16.gmra.mxu1 %v2790_v53 }
  0x5f   :  { %479 = vmatprep.mubr.bf16.mxu0 %v2677_v0  ;;  %559 = vmatprep.mubr.bf16.mxu1 %v2677_v0 }
  0x60   :  { %1387 = vmatprep.subr.bf16.mxu0 %v2553_v63 }
  0x61   :  { %1388 = vmatpush2.bf16.msra.mxu0 %v2551_v62 }
  0x62   :  { %1389 = vmatprep.subr.bf16.mxu0 %v2559_v4 }
  0x65   :  { %1390 = vmatpush2.bf16.msra.mxu0 %v2557_v3 }
  0x66   :  { %480 = vmatmul.mubr.bf16.gmra.mxu0 %v2799_v58  ;;  %560 = vmatmul.mubr.bf16.gmra.mxu1 %v2804_v59 }
  0x67   :  { %489 = vmatprep.mubr.bf16.mxu0 %v2677_v0  ;;  %569 = vmatprep.mubr.bf16.mxu1 %v2677_v0 }
  0x68   :  { %1391 = vmatprep.subr.bf16.mxu0 %v2562_v5 }
  0x69   :  { %1392 = vmatpush2.bf16.msra.mxu0 %v2560_v6 }
  0x6a   :  { %1393 = vmatprep.subr.bf16.mxu0 %v2568_v10 }
  0x6d   :  { %1394 = vmatpush2.bf16.msra.mxu0 %v2566_v9 }
  0x6e   :  { %490 = vmatmul.mubr.bf16.gmra.mxu0 %v2813_v1  ;;  %570 = vmatmul.mubr.bf16.gmra.mxu1 %v2818_v2 }
  0x6f   :  { %499 = vmatprep.mubr.bf16.mxu0 %v2677_v0  ;;  %579 = vmatprep.mubr.bf16.mxu1 %v2677_v0 }
  0x70   :  { %1395 = vmatprep.subr.bf16.mxu0 %v2571_v11 }
  0x71   :  { %1396 = vmatpush2.bf16.msra.mxu0 %v2569_v12 }
  0x72   :  { %1397 = vmatprep.subr.bf16.mxu0 %v2577_v15 }
  0x75   :  { %1398 = vmatpush2.bf16.msra.mxu0 %v2575_v17 }
  0x76   :  { %500 = vmatmul.mubr.bf16.gmra.mxu0 %v2827_v7  ;;  %580 = vmatmul.mubr.bf16.gmra.mxu1 %v2832_v8 }
  0x77   :  { %622 = vmatprep.mubr.bf16.mxu1 %v2677_v0  ;;  %1399 = vmatprep.subr.bf16.mxu0 %v2580_v21 }
  0x79   :  { %1400 = vmatpush2.bf16.msra.mxu0 %v2578_v24 }
  0x7a   :  { %1401 = vmatprep.subr.bf16.mxu0 %v2586_v27 }
  0x7d   :  { %1402 = vmatpush2.bf16.msra.mxu0 %v2584_v29 }
  0x7e   :  { %623 = vmatmul.mubr.bf16.vlgmr.msra.gmra.mxu1 %v2729_v18  ;;  %v2545_v18 = vld [vmem:[#allocation4 + $0x140] ss:$8 sps:$4 sm:$0xff]  }
  0x7f   :  { %632 = vmatprep.mubr.bf16.mxu1 %v2677_v0  ;;  %1565 = vmatpush1.bf16.msra.mxu1 %v2518_v13 }
  0x80   :  { %1566 = vmatprep.subr.bf16.mxu1 %v2529_v14 }
  0x83   :  { %1567 = vmatpush1.bf16.msra.mxu1 %v2527_v16 }
  0x84   :  { %1568 = vmatprep.subr.bf16.mxu1 %v2538_v20 }
  0x86   :  { %633 = vmatmul.mubr.bf16.gmra.mxu1 %v2743_v23  ;;  %v2563_v23 = vld [vmem:[#allocation4 + $0x120] ss:$8 sps:$4 sm:$0xff]  }
  0x87   :  { %642 = vmatprep.mubr.bf16.mxu1 %v2677_v0  ;;  %1569 = vmatpush1.bf16.msra.mxu1 %v2536_v22 }
  0x88   :  { %1570 = vmatprep.subr.bf16.mxu1 %v2547_v26 }
  0x8b   :  { %1571 = vmatpush1.bf16.msra.mxu1 %v2545_v18 }
  0x8c   :  { %1572 = vmatprep.subr.bf16.mxu1 %v2556_v28 }
  0x8e   :  { %643 = vmatmul.mubr.bf16.gmra.mxu1 %v2757_v32  ;;  %v2587_v32 = vld [vmem:[#allocation4 + $0x1f0] ss:$8 sps:$4 sm:$0xff]  }
  0x8f   :  { %652 = vmatprep.mubr.bf16.mxu1 %v2677_v0  ;;  %1573 = vmatpush1.bf16.msra.mxu1 %v2554_v30 }
  0x90   :  { %1574 = vmatprep.subr.bf16.mxu1 %v2565_v31 }
  0x93   :  { %1575 = vmatpush1.bf16.msra.mxu1 %v2563_v23 }
  0x94   :  { %1576 = vmatprep.subr.bf16.mxu1 %v2574_v34 }
  0x96   :  { %653 = vmatmul.mubr.bf16.gmra.mxu1 %v2771_v42  ;;  %v2593_v42 = vld [vmem:[#allocation4 + $0x1d0] ss:$8 sps:$4 sm:$0xff]  }
  0x97   :  { %662 = vmatprep.mubr.bf16.mxu1 %v2677_v0  ;;  %1577 = vmatpush1.bf16.msra.mxu1 %v2572_v35 }
  0x98   :  { %1578 = vmatprep.subr.bf16.mxu1 %v2583_v36 }
  0x9b   :  { %1579 = vmatpush1.bf16.msra.mxu1 %v2581_v37 }
  0x9c   :  { %1580 = vmatprep.subr.bf16.mxu1 %v2589_v38 }
  0x9e   :  { %663 = vmatmul.mubr.bf16.gmra.mxu1 %v2785_v52  ;;  %v2608_v52 = vld [vmem:[#allocation4 + $0x180] ss:$8 sps:$4 sm:$0xff]  }
  0x9f   :  { %672 = vmatprep.mubr.bf16.mxu1 %v2677_v0  ;;  %1581 = vmatpush2.bf16.msra.mxu1 %v2587_v32 }
  0xa0   :  { %1582 = vmatprep.subr.bf16.mxu1 %v2592_v39 }
  0xa3   :  { %1583 = vmatpush2.bf16.msra.mxu1 %v2590_v40 }
  0xa4   :  { %1584 = vmatprep.subr.bf16.mxu1 %v2595_v41 }
  0xa6   :  { %673 = vmatmul.mubr.bf16.gmra.mxu1 %v2799_v58 }
  0xa7   :  { %682 = vmatprep.mubr.bf16.mxu1 %v2677_v0  ;;  %1585 = vmatpush2.bf16.msra.mxu1 %v2593_v42 }
  0xa8   :  { %1586 = vmatprep.subr.bf16.mxu1 %v2598_v45 }
  0xab   :  { %1587 = vmatpush2.bf16.msra.mxu1 %v2596_v44 }
  0xac   :  { %1588 = vmatprep.subr.bf16.mxu1 %v2601_v47 }
  0xae   :  { %683 = vmatmul.mubr.bf16.gmra.mxu1 %v2813_v1 }
  0xaf   :  { %692 = vmatprep.mubr.bf16.mxu1 %v2677_v0  ;;  %1589 = vmatpush2.bf16.msra.mxu1 %v2599_v46 }
  0xb0   :  { %1590 = vmatprep.subr.bf16.mxu1 %v2604_v49 }
  0xb3   :  { %1591 = vmatpush2.bf16.msra.mxu1 %v2602_v48 }
  0xb4   :  { %1592 = vmatprep.subr.bf16.mxu1 %v2607_v51 }
  0xb6   :  { %693 = vmatmul.mubr.bf16.gmra.mxu1 %v2827_v7 }
  0xb7   :  { %702 = vmatprep.mubr.bf16.mxu1 %v2677_v0  ;;  %1593 = vmatpush2.bf16.msra.mxu1 %v2605_v50 }
  0xb8   :  { %1594 = vmatprep.subr.bf16.mxu1 %v2610_v54 }
  0xbb   :  { %1595 = vmatpush2.bf16.msra.mxu1 %v2608_v52 }
  0xbe   :  { %703 = vmatmul.mubr.bf16.gmra.mxu1 %v2734_v19  ;;  %v121_v19 = vlaneseq }
  0xbf   :  { %712 = vmatprep.mubr.bf16.mxu1 %v2677_v0 }
  0xc6   :  { %713 = vmatmul.mubr.bf16.gmra.mxu1 %v2748_v25  ;;  %v2867_v25 = vshrl.u32 %v121_v19, 7 }
  0xc7   :  { %722 = vmatprep.mubr.bf16.mxu1 %v2677_v0 }
  0xc8   :  { %v127_v55 = vsub.s32 1, %v2867_v25 }
  0xce   :  { %723 = vmatmul.mubr.bf16.gmra.mxu1 %v2762_v33  ;;  %v123_v33 = vsub.s32 0, %v2867_v25 }
  0xcf   :  { %732 = vmatprep.mubr.bf16.mxu1 %v2677_v0 }
  0xd6   :  { %733 = vmatmul.mubr.bf16.gmra.mxu1 %v2776_v43  ;;  %v2874_v43 = vld [vmem:[%s3491_s2] sm:$0xf] }
  0xd7   :  { %742 = vmatprep.mubr.bf16.mxu1 %v2677_v0  ;;  %v2886_v58 = vrot.slane %v2874_v43, %v127_v55 }
  0xde   :  { %743 = vmatmul.mubr.bf16.gmra.mxu1 %v2790_v53  ;;  %v2879_v53 = vrot.slane %v2874_v43, %v123_v33 }
  0xdf   :  { %752 = vmatprep.mubr.bf16.mxu1 %v2677_v0 }
  0xe6   :  { %753 = vmatmul.mubr.bf16.gmra.mxu1 %v2804_v59 }
  0xe7   :  { %762 = vmatprep.mubr.bf16.mxu1 %v2677_v0 }
  0xee   :  { %763 = vmatmul.mubr.bf16.gmra.mxu1 %v2818_v2 }
  0xef   :  { %772 = vmatprep.mubr.bf16.mxu1 %v2677_v0 }
  0xf6   :  { %773 = vmatmul.mubr.bf16.gmra.mxu1 %v2832_v8 }
  0xfe   :  { %v431_v0 = vpop.f32.mrf.mxu0  ;;  %v511_v56 = vpop.f32.mrf.mxu1 }
  0xff   :  { %v512_v57 = vadd.f32 %v511_v56, %v2879_v53  ;;  %v432_v59 = vadd.f32 %v431_v0, %v2879_v53 }
 0x100   :  { %v433_v60 = vpop.f32.mrf.mxu0  ;;  %v2889_v61 = vpop.f32.mrf.mxu1 }
 0x101   :  { %v434_v62 = vadd.f32 %v433_v60, %v2886_v58  ;;  %v783_v4 = vmax.f32 %v432_v59, 0.0  ;;  %v847_v5 = vmax.f32 %v512_v57, 0.0 }
 0x102   :  { %v435_v63 = vpop.f32.mrf.mxu0  ;;  %v515_v1 = vpop.f32.mrf.mxu1 }
 0x103   :  { %v436_v2 = vadd.f32 %v435_v63, %v2879_v53  ;;  %v516_v3 = vadd.f32 %v515_v1, %v2879_v53  ;;  %v784_v8 = vmax.f32 %v434_v62, 0.0 }
 0x104   :  { %v437_v6 = vpop.f32.mrf.mxu0  ;;  %v2894_v7 = vpop.f32.mrf.mxu1 }
 0x105   :  { %v787_v9 = vmax.f32 %v436_v2, 0.0  ;;  %v851_v10 = vmax.f32 %v516_v3, 0.0  ;;  %v438_v11 = vadd.f32 %v437_v6, %v2886_v58 }
 0x106   :  { %v441_v12 = vpop.f32.mrf.mxu0  ;;  %v521_v13 = vpop.f32.mrf.mxu1 }
 0x107   :  { %v2897_v14 = vpack.c.bf16 %v851_v10, %v847_v5  ;;  %v788_v15 = vmax.f32 %v438_v11, 0.0  ;;  %v911_v16 = vpack.c.bf16 %v787_v9, %v783_v4  ;;  %v442_v17 = vadd.f32 %v441_v12, %v2879_v53 }
 0x108   :  { %v522_v20 = vadd.f32 %v521_v13, %v2879_v53  ;;  %v443_v21 = vpop.f32.mrf.mxu0  ;;  %v2901_v22 = vpop.f32.mrf.mxu1 }
 0x109   :  { %v444_v24 = vadd.f32 %v443_v21, %v2886_v58  ;;  %v912_v26 = vpack.c.bf16 %v788_v15, %v784_v8  ;;  %v791_v30 = vmax.f32 %v442_v17, 0.0 }
 0x10a   :  { %v445_v18 = vpop.f32.mrf.mxu0  ;;  %v525_v27 = vpop.f32.mrf.mxu1  ;;  %v855_v31 = vmax.f32 %v522_v20, 0.0 }
 0x10b   :  { %v446_v28 = vadd.f32 %v445_v18, %v2879_v53  ;;  %v526_v29 = vadd.f32 %v525_v27, %v2879_v53  ;;  %1403 = vmatprep.mubr.bf16.mxu0 %v912_v26  ;;  %v792_v35 = vmax.f32 %v444_v24, 0.0 }
 0x10c   :  { %v447_v23 = vpop.f32.mrf.mxu0  ;;  %v2906_v34 = vpop.f32.mrf.mxu1  ;;  %1404 = vmatmul.mubr.bf16.vlgmr.msra.gmra.mxu0 %v911_v16 }
 0x10d   :  { %v795_v36 = vmax.f32 %v446_v28, 0.0  ;;  %v859_v37 = vmax.f32 %v526_v29, 0.0  ;;  %v448_v38 = vadd.f32 %v447_v23, %v2886_v58 }
 0x10e   :  { %v451_v32 = vpop.f32.mrf.mxu0  ;;  %v531_v39 = vpop.f32.mrf.mxu1 }
 0x10f   :  { %v2909_v40 = vpack.c.bf16 %v859_v37, %v855_v31  ;;  %v796_v41 = vmax.f32 %v448_v38, 0.0  ;;  %v915_v42 = vpack.c.bf16 %v795_v36, %v791_v30  ;;  %v452_v44 = vadd.f32 %v451_v32, %v2879_v53  ;;  %v2611_v36 = vld [vmem:[%s3494_s5 + $0x78] sm:$0xff]  }
 0x110   :  { %v532_v45 = vadd.f32 %v531_v39, %v2879_v53  ;;  %v453_v46 = vpop.f32.mrf.mxu0  ;;  %v2913_v47 = vpop.f32.mrf.mxu1  ;;  %v2612_v37 = vld [vmem:[%s3494_s5 + $0x38] sm:$0xff]   ;;  %2316 = vmatprep.subr.bf16.mxu0 %v2611_v36 }
 0x111   :  { %v454_v48 = vadd.f32 %v453_v46, %v2886_v58  ;;  %v916_v49 = vpack.c.bf16 %v796_v41, %v792_v35  ;;  %v799_v19 = vmax.f32 %v452_v44, 0.0  ;;  %2317 = vmatpush3.bf16.msra.mxu0 %v2612_v37 }
 0x112   :  { %v455_v50 = vpop.f32.mrf.mxu0  ;;  %v535_v51 = vpop.f32.mrf.mxu1  ;;  %v863_v0 = vmax.f32 %v532_v45, 0.0 }
 0x113   :  { %v456_v52 = vadd.f32 %v455_v50, %v2879_v53  ;;  %v536_v54 = vadd.f32 %v535_v51, %v2879_v53  ;;  %1413 = vmatprep.mubr.bf16.mxu0 %v916_v49  ;;  %v800_v59 = vmax.f32 %v454_v48, 0.0 }
 0x114   :  { %v457_v56 = vpop.f32.mrf.mxu0  ;;  %v2918_v57 = vpop.f32.mrf.mxu1  ;;  %1414 = vmatmul.mubr.bf16.gmra.mxu0 %v915_v42 }
 0x115   :  { %v803_v60 = vmax.f32 %v456_v52, 0.0  ;;  %v867_v62 = vmax.f32 %v536_v54, 0.0  ;;  %v458_v63 = vadd.f32 %v457_v56, %v2886_v58 }
 0x116   :  { %v461_v1 = vpop.f32.mrf.mxu0  ;;  %v541_v2 = vpop.f32.mrf.mxu1 }
 0x117   :  { %v2921_v3 = vpack.c.bf16 %v867_v62, %v863_v0  ;;  %v804_v4 = vmax.f32 %v458_v63, 0.0  ;;  %v919_v5 = vpack.c.bf16 %v803_v60, %v799_v19  ;;  %v462_v6 = vadd.f32 %v461_v1, %v2879_v53 }
 0x118   :  { %v542_v8 = vadd.f32 %v541_v2, %v2879_v53  ;;  %v463_v9 = vpop.f32.mrf.mxu0  ;;  %v2925_v10 = vpop.f32.mrf.mxu1 }
 0x119   :  { %v464_v11 = vadd.f32 %v463_v9, %v2886_v58  ;;  %v920_v12 = vpack.c.bf16 %v804_v4, %v800_v59  ;;  %v807_v20 = vmax.f32 %v462_v6, 0.0 }
 0x11a   :  { %v465_v13 = vpop.f32.mrf.mxu0  ;;  %v545_v15 = vpop.f32.mrf.mxu1  ;;  %v871_v21 = vmax.f32 %v542_v8, 0.0 }
 0x11b   :  { %v466_v16 = vadd.f32 %v465_v13, %v2879_v53  ;;  %v546_v17 = vadd.f32 %v545_v15, %v2879_v53  ;;  %1423 = vmatprep.mubr.bf16.mxu0 %v920_v12  ;;  %v808_v18 = vmax.f32 %v464_v11, 0.0 }
 0x11c   :  { %v467_v24 = vpop.f32.mrf.mxu0  ;;  %v2930_v26 = vpop.f32.mrf.mxu1  ;;  %1424 = vmatmul.mubr.bf16.gmra.mxu0 %v919_v5 }
 0x11d   :  { %v811_v27 = vmax.f32 %v466_v16, 0.0  ;;  %v875_v28 = vmax.f32 %v546_v17, 0.0  ;;  %v468_v29 = vadd.f32 %v467_v24, %v2886_v58 }
 0x11e   :  { %v471_v30 = vpop.f32.mrf.mxu0  ;;  %v551_v31 = vpop.f32.mrf.mxu1 }
 0x11f   :  { %v2933_v23 = vpack.c.bf16 %v875_v28, %v871_v21  ;;  %v812_v35 = vmax.f32 %v468_v29, 0.0  ;;  %v923_v38 = vpack.c.bf16 %v811_v27, %v807_v20  ;;  %v472_v32 = vadd.f32 %v471_v30, %v2879_v53 }
 0x120   :  { %v552_v39 = vadd.f32 %v551_v31, %v2879_v53  ;;  %v473_v41 = vpop.f32.mrf.mxu0  ;;  %v2943_v42 = vpop.f32.mrf.mxu1 }
 0x121   :  { %v474_v44 = vadd.f32 %v473_v41, %v2886_v58  ;;  %v924_v45 = vpack.c.bf16 %v812_v35, %v808_v18  ;;  %v815_v51 = vmax.f32 %v472_v32, 0.0  ;;  %v2614_v32 = vld [vmem:[%s3494_s5 + $0x30] sm:$0xff]  }
 0x122   :  { %v475_v46 = vpop.f32.mrf.mxu0  ;;  %v555_v48 = vpop.f32.mrf.mxu1  ;;  %v879_v52 = vmax.f32 %v552_v39, 0.0 }
 0x123   :  { %v476_v49 = vadd.f32 %v475_v46, %v2879_v53  ;;  %v556_v50 = vadd.f32 %v555_v48, %v2879_v53  ;;  %1433 = vmatprep.mubr.bf16.mxu0 %v924_v45  ;;  %v816_v0 = vmax.f32 %v474_v44, 0.0 }
 0x124   :  { %v477_v54 = vpop.f32.mrf.mxu0  ;;  %v2948_v19 = vpop.f32.mrf.mxu1  ;;  %1434 = vmatmul.mubr.bf16.gmra.mxu0 %v923_v38  ;;  %v2613_v38 = vld [vmem:[%s3494_s5 + $0x70] sm:$0xff]  }
 0x125   :  { %v819_v56 = vmax.f32 %v476_v49, 0.0  ;;  %v883_v59 = vmax.f32 %v556_v50, 0.0  ;;  %v478_v60 = vadd.f32 %v477_v54, %v2886_v58  ;;  %2318 = vmatprep.subr.bf16.mxu0 %v2613_v38 }
 0x126   :  { %v481_v62 = vpop.f32.mrf.mxu0  ;;  %v561_v63 = vpop.f32.mrf.mxu1  ;;  %2319 = vmatpush3.bf16.msra.mxu0 %v2614_v32 }
 0x127   :  { %v2951_v1 = vpack.c.bf16 %v883_v59, %v879_v52  ;;  %v820_v2 = vmax.f32 %v478_v60, 0.0  ;;  %v927_v4 = vpack.c.bf16 %v819_v56, %v815_v51  ;;  %v482_v5 = vadd.f32 %v481_v62, %v2879_v53 }
 0x128   :  { %v562_v6 = vadd.f32 %v561_v63, %v2879_v53  ;;  %v483_v8 = vpop.f32.mrf.mxu0  ;;  %v2955_v9 = vpop.f32.mrf.mxu1 }
 0x129   :  { %v484_v11 = vadd.f32 %v483_v8, %v2886_v58  ;;  %v928_v12 = vpack.c.bf16 %v820_v2, %v816_v0  ;;  %v823_v20 = vmax.f32 %v482_v5, 0.0 }
 0x12a   :  { %v485_v13 = vpop.f32.mrf.mxu0  ;;  %v565_v15 = vpop.f32.mrf.mxu1  ;;  %v887_v21 = vmax.f32 %v562_v6, 0.0 }
 0x12b   :  { %v486_v16 = vadd.f32 %v485_v13, %v2879_v53  ;;  %v566_v17 = vadd.f32 %v565_v15, %v2879_v53  ;;  %1443 = vmatprep.mubr.bf16.mxu0 %v928_v12  ;;  %v824_v27 = vmax.f32 %v484_v11, 0.0 }
 0x12c   :  { %v487_v24 = vpop.f32.mrf.mxu0  ;;  %v2960_v18 = vpop.f32.mrf.mxu1  ;;  %1444 = vmatmul.mubr.bf16.gmra.mxu0 %v927_v4 }
 0x12d   :  { %v827_v28 = vmax.f32 %v486_v16, 0.0  ;;  %v891_v29 = vmax.f32 %v566_v17, 0.0  ;;  %v488_v30 = vadd.f32 %v487_v24, %v2886_v58 }
 0x12e   :  { %v491_v31 = vpop.f32.mrf.mxu0  ;;  %v571_v35 = vpop.f32.mrf.mxu1 }
 0x12f   :  { %v2963_v36 = vpack.c.bf16 %v891_v29, %v887_v21  ;;  %v828_v37 = vmax.f32 %v488_v30, 0.0  ;;  %v931_v39 = vpack.c.bf16 %v827_v28, %v823_v20  ;;  %v492_v41 = vadd.f32 %v491_v31, %v2879_v53 }
 0x130   :  { %v572_v44 = vadd.f32 %v571_v35, %v2879_v53  ;;  %v493_v45 = vpop.f32.mrf.mxu0  ;;  %v2973_v46 = vpop.f32.mrf.mxu1  ;;  %v518_v28 = vadd.f32 %v2894_v7, %v2886_v58  ;;  %v135_v31 = vsub.s32 3, %v2867_v25  ;;  %v514_v35 = vadd.f32 %v2889_v61, %v2886_v58 }
 0x131   :  { %v494_v48 = vadd.f32 %v493_v45, %v2886_v58  ;;  %v932_v49 = vpack.c.bf16 %v828_v37, %v824_v27  ;;  %v831_v0 = vmax.f32 %v492_v41, 0.0  ;;  %v131_v41 = vsub.s32 2, %v2867_v25 }
 0x132   :  { %v495_v50 = vpop.f32.mrf.mxu0  ;;  %v575_v51 = vpop.f32.mrf.mxu1  ;;  %v895_v56 = vmax.f32 %v572_v44, 0.0  ;;  %v3002_v61 = vrot.slane %v2874_v43, %v135_v31 }
 0x133   :  { %v496_v52 = vadd.f32 %v495_v50, %v2879_v53  ;;  %v576_v54 = vadd.f32 %v575_v51, %v2879_v53  ;;  %1453 = vmatprep.mubr.bf16.mxu0 %v932_v49  ;;  %v832_v62 = vmax.f32 %v494_v48, 0.0  ;;  %v852_v49 = vmax.f32 %v518_v28, 0.0 }
 0x134   :  { %v497_v59 = vpop.f32.mrf.mxu0  ;;  %v2978_v60 = vpop.f32.mrf.mxu1  ;;  %1454 = vmatmul.mubr.bf16.gmra.mxu0 %v931_v39 }
 0x135   :  { %v835_v63 = vmax.f32 %v496_v52, 0.0  ;;  %v899_v2 = vmax.f32 %v576_v54, 0.0  ;;  %v498_v4 = vadd.f32 %v497_v59, %v2886_v58  ;;  %v2615_v52 = vld [vmem:[%s3494_s5 + $0x68] sm:$0xff]  }
 0x136   :  { %v501_v5 = vpop.f32.mrf.mxu0  ;;  %v581_v6 = vpop.f32.mrf.mxu1  ;;  %v2616_v54 = vld [vmem:[%s3494_s5 + $0x28] sm:$0xff]   ;;  %2320 = vmatprep.subr.bf16.mxu0 %v2615_v52 }
 0x137   :  { %v2981_v8 = vpack.c.bf16 %v899_v2, %v895_v56  ;;  %v836_v11 = vmax.f32 %v498_v4, 0.0  ;;  %v935_v12 = vpack.c.bf16 %v835_v63, %v831_v0  ;;  %v502_v13 = vadd.f32 %v501_v5, %v2879_v53  ;;  %2321 = vmatpush3.bf16.msra.mxu0 %v2616_v54 }
 0x138   :  { %v582_v15 = vadd.f32 %v581_v6, %v2879_v53  ;;  %v503_v16 = vpop.f32.mrf.mxu0  ;;  %v2985_v17 = vpop.f32.mrf.mxu1  ;;  %v3011_v56 = vrot.slane %v2874_v43, %v131_v41  ;;  %v528_v4 = vadd.f32 %v2906_v34, %v2886_v58  ;;  %v2617_v43 = vld [vmem:[%s3494_s5 + $0x60] sm:$0xff]   ;;  %v524_v34 = vadd.f32 %v2901_v22, %v2886_v58 }
 0x139   :  { %v504_v20 = vadd.f32 %v503_v16, %v2886_v58  ;;  %v936_v21 = vpack.c.bf16 %v836_v11, %v832_v62  ;;  %v839_v37 = vmax.f32 %v502_v13, 0.0  ;;  %v848_v62 = vmax.f32 %v514_v35, 0.0  ;;  %2322 = vmatprep.subr.bf16.mxu0 %v2617_v43 }
 0x13a   :  { %v505_v24 = vpop.f32.mrf.mxu0  ;;  %v585_v27 = vpop.f32.mrf.mxu1  ;;  %v903_v38 = vmax.f32 %v582_v15, 0.0  ;;  %v2618_v15 = vld [vmem:[%s3494_s5 + $0x20] sm:$0xff]   ;;  %v856_v31 = vmax.f32 %v524_v34, 0.0 }
 0x13b   :  { %v506_v29 = vadd.f32 %v505_v24, %v2879_v53  ;;  %v586_v30 = vadd.f32 %v585_v27, %v2879_v53  ;;  %1463 = vmatprep.mubr.bf16.mxu0 %v936_v21  ;;  %v840_v44 = vmax.f32 %v504_v20, 0.0  ;;  %v944_v11 = vpack.c.bf16 %v852_v49, %v848_v62  ;;  %2323 = vmatpush3.bf16.msra.mxu0 %v2618_v15 }
 0x13c   :  { %v507_v32 = vpop.f32.mrf.mxu0  ;;  %v2995_v39 = vpop.f32.mrf.mxu1  ;;  %1464 = vmatmul.mubr.bf16.gmra.mxu0 %v935_v12  ;;  %v860_v24 = vmax.f32 %v528_v4, 0.0 }
 0x13d   :  { %v843_v7 = vmax.f32 %v506_v29, 0.0  ;;  %v907_v45 = vmax.f32 %v586_v30, 0.0  ;;  %v508_v48 = vadd.f32 %v507_v32, %v2886_v58  ;;  %v538_v32 = vadd.f32 %v2918_v57, %v2886_v58 }
 0x13e   :  { %v624_v53 = vpop.f32.mrf.mxu1 }
 0x13f   :  { %v2999_v50 = vpack.c.bf16 %v907_v45, %v903_v38  ;;  %v844_v51 = vmax.f32 %v508_v48, 0.0  ;;  %v939_v0 = vpack.c.bf16 %v843_v7, %v839_v37  ;;  %v625_v12 = vadd.f32 %v624_v53, %v3011_v56 }
 0x140   :  { %v626_v59 = vpop.f32.mrf.mxu1  ;;  %v534_v48 = vadd.f32 %v2913_v47, %v2886_v58 }
 0x141   :  { %v940_v63 = vpack.c.bf16 %v844_v51, %v840_v44  ;;  %v627_v5 = vadd.f32 %v626_v59, %v3002_v61  ;;  %v785_v29 = vmax.f32 %v625_v12, 0.0  ;;  %v948_v44 = vpack.c.bf16 %v860_v24, %v856_v31 }
 0x142   :  { %v628_v2 = vpop.f32.mrf.mxu1  ;;  %v868_v51 = vmax.f32 %v538_v32, 0.0  ;;  %v864_v62 = vmax.f32 %v534_v48, 0.0 }
 0x143   :  { %v629_v6 = vadd.f32 %v628_v2, %v3011_v56  ;;  %1473 = vmatprep.mubr.bf16.mxu0 %v940_v63  ;;  %v786_v27 = vmax.f32 %v627_v5, 0.0 }
 0x144   :  { %v630_v13 = vpop.f32.mrf.mxu1  ;;  %1474 = vmatmul.mubr.bf16.gmra.mxu0 %v939_v0 }
 0x145   :  { %v631_v16 = vadd.f32 %v630_v13, %v3002_v61  ;;  %1483 = vmatprep.mubr.bf16.mxu0 %v944_v11  ;;  %v789_v20 = vmax.f32 %v629_v6, 0.0  ;;  %v952_v6 = vpack.c.bf16 %v868_v51, %v864_v62  ;;  %v544_v13 = vadd.f32 %v2925_v10, %v2886_v58 }
 0x146   :  { %v634_v21 = vpop.f32.mrf.mxu1 }
 0x147   :  { %v790_v28 = vmax.f32 %v631_v16, 0.0  ;;  %v913_v37 = vpack.c.bf16 %v789_v20, %v785_v29  ;;  %v635_v7 = vadd.f32 %v634_v21, %v3011_v56 }
 0x148   :  { %v636_v30 = vpop.f32.mrf.mxu1 }
 0x149   :  { %v914_v35 = vpack.c.bf16 %v790_v28, %v786_v27  ;;  %v637_v22 = vadd.f32 %v636_v30, %v3002_v61  ;;  %v793_v0 = vmax.f32 %v635_v7, 0.0  ;;  %v872_v27 = vmax.f32 %v544_v13, 0.0 }
 0x14a   :  { %v638_v38 = vpop.f32.mrf.mxu1 }
 0x14b   :  { %v639_v41 = vadd.f32 %v638_v38, %v3011_v56  ;;  %1596 = vmatprep.mubr.bf16.mxu1 %v914_v35  ;;  %v794_v52 = vmax.f32 %v637_v22, 0.0  ;;  %v2620_v38 = vld [vmem:[%s3494_s5 + $0x18] sm:$0xff]  }
 0x14c   :  { %v640_v45 = vpop.f32.mrf.mxu1  ;;  %1484 = vmatmul.mubr.bf16.gmra.mxu0 %v2897_v14  ;;  %1597 = vmatmul.mubr.bf16.vlgmr.msra.gmra.mxu1 %v913_v37  ;;  %v548_v14 = vadd.f32 %v2930_v26, %v2886_v58  ;;  %v2619_v37 = vld [vmem:[%s3494_s5 + $0x58] sm:$0xff]  }
 0x14d   :  { %v641_v53 = vadd.f32 %v640_v45, %v3002_v61  ;;  %1493 = vmatprep.mubr.bf16.mxu0 %v948_v44  ;;  %v797_v49 = vmax.f32 %v639_v41, 0.0  ;;  %2324 = vmatprep.subr.bf16.mxu0 %v2619_v37 }
 0x14e   :  { %v644_v57 = vpop.f32.mrf.mxu1  ;;  %v876_v34 = vmax.f32 %v548_v14, 0.0  ;;  %2325 = vmatpush3.bf16.msra.mxu0 %v2620_v38 }
 0x14f   :  { %v798_v54 = vmax.f32 %v641_v53, 0.0  ;;  %v917_v2 = vpack.c.bf16 %v797_v49, %v793_v0  ;;  %v645_v11 = vadd.f32 %v644_v57, %v3011_v56  ;;  %v568_v0 = vadd.f32 %v2960_v18, %v2886_v58 }
 0x150   :  { %v646_v59 = vpop.f32.mrf.mxu1  ;;  %v956_v35 = vpack.c.bf16 %v876_v34, %v872_v27 }
 0x151   :  { %v918_v63 = vpack.c.bf16 %v798_v54, %v794_v52  ;;  %v647_v5 = vadd.f32 %v646_v59, %v3002_v61  ;;  %v801_v21 = vmax.f32 %v645_v11, 0.0 }
 0x152   :  { %v648_v4 = vpop.f32.mrf.mxu1 }
 0x153   :  { %v649_v47 = vadd.f32 %v648_v4, %v3011_v56  ;;  %1606 = vmatprep.mubr.bf16.mxu1 %v918_v63  ;;  %v802_v16 = vmax.f32 %v647_v5, 0.0  ;;  %v564_v4 = vadd.f32 %v2955_v9, %v2886_v58 }
 0x154   :  { %v650_v12 = vpop.f32.mrf.mxu1  ;;  %1494 = vmatmul.mubr.bf16.gmra.mxu0 %v2909_v40  ;;  %1607 = vmatmul.mubr.bf16.gmra.mxu1 %v917_v2  ;;  %v558_v40 = vadd.f32 %v2948_v19, %v2886_v58  ;;  %v554_v19 = vadd.f32 %v2943_v42, %v2886_v58 }
 0x155   :  { %v651_v43 = vadd.f32 %v650_v12, %v3002_v61  ;;  %1503 = vmatprep.mubr.bf16.mxu0 %v952_v6  ;;  %v805_v15 = vmax.f32 %v649_v47, 0.0  ;;  %v892_v47 = vmax.f32 %v568_v0, 0.0 }
 0x156   :  { %v654_v26 = vpop.f32.mrf.mxu1  ;;  %v884_v45 = vmax.f32 %v558_v40, 0.0  ;;  %v880_v51 = vmax.f32 %v554_v19, 0.0 }
 0x157   :  { %v806_v20 = vmax.f32 %v651_v43, 0.0  ;;  %v921_v29 = vpack.c.bf16 %v805_v15, %v801_v21  ;;  %v655_v32 = vadd.f32 %v654_v26, %v3011_v56  ;;  %v888_v43 = vmax.f32 %v564_v4, 0.0  ;;  %v2621_v21 = vld [vmem:[%s3494_s5 + $0x50] sm:$0xff]   ;;  %v2624_v4 = vld [vmem:[%s3494_s5 + $0x8] sm:$0xff]  }
 0x158   :  { %v656_v24 = vpop.f32.mrf.mxu1  ;;  %v960_v62 = vpack.c.bf16 %v884_v45, %v880_v51  ;;  %2326 = vmatprep.subr.bf16.mxu0 %v2621_v21 }
 0x159   :  { %v922_v28 = vpack.c.bf16 %v806_v20, %v802_v16  ;;  %v657_v31 = vadd.f32 %v656_v24, %v3002_v61  ;;  %v809_v49 = vmax.f32 %v655_v32, 0.0  ;;  %v964_v20 = vpack.c.bf16 %v892_v47, %v888_v43  ;;  %v2622_v24 = vld [vmem:[%s3494_s5 + $0x10] sm:$0xff]  }
 0x15a   :  { %v658_v30 = vpop.f32.mrf.mxu1  ;;  %2327 = vmatpush3.bf16.msra.mxu0 %v2622_v24 }
 0x15b   :  { %v659_v10 = vadd.f32 %v658_v30, %v3011_v56  ;;  %1616 = vmatprep.mubr.bf16.mxu1 %v922_v28  ;;  %v810_v48 = vmax.f32 %v657_v31, 0.0 }
 0x15c   :  { %v660_v22 = vpop.f32.mrf.mxu1  ;;  %1504 = vmatmul.mubr.bf16.gmra.mxu0 %v2921_v3  ;;  %1617 = vmatmul.mubr.bf16.gmra.mxu1 %v921_v29 }
 0x15d   :  { %v661_v41 = vadd.f32 %v660_v22, %v3002_v61  ;;  %1513 = vmatprep.mubr.bf16.mxu0 %v956_v35  ;;  %v813_v44 = vmax.f32 %v659_v10, 0.0 }
 0x15e   :  { %v664_v7 = vpop.f32.mrf.mxu1 }
 0x15f   :  { %v814_v53 = vmax.f32 %v661_v41, 0.0  ;;  %v925_v54 = vpack.c.bf16 %v813_v44, %v809_v49  ;;  %v665_v63 = vadd.f32 %v664_v7, %v3011_v56  ;;  %v588_v41 = vadd.f32 %v2995_v39, %v2886_v58 }
 0x160   :  { %v666_v57 = vpop.f32.mrf.mxu1 }
 0x161   :  { %v926_v52 = vpack.c.bf16 %v814_v53, %v810_v48  ;;  %v667_v42 = vadd.f32 %v666_v57, %v3002_v61  ;;  %v817_v12 = vmax.f32 %v665_v63, 0.0  ;;  %v584_v53 = vadd.f32 %v2985_v17, %v2886_v58  ;;  %v2623_v17 = vld [vmem:[%s3494_s5 + $0x48] sm:$0xff]  }
 0x162   :  { %v668_v3 = vpop.f32.mrf.mxu1  ;;  %v908_v51 = vmax.f32 %v588_v41, 0.0  ;;  %2328 = vmatprep.subr.bf16.mxu0 %v2623_v17 }
 0x163   :  { %v669_v59 = vadd.f32 %v668_v3, %v3011_v56  ;;  %1626 = vmatprep.mubr.bf16.mxu1 %v926_v52  ;;  %v818_v6 = vmax.f32 %v667_v42, 0.0  ;;  %v904_v42 = vmax.f32 %v584_v53, 0.0  ;;  %2329 = vmatpush3.bf16.msra.mxu0 %v2624_v4 }
 0x164   :  { %v670_v2 = vpop.f32.mrf.mxu1  ;;  %1514 = vmatmul.mubr.bf16.gmra.mxu0 %v2933_v23  ;;  %1627 = vmatmul.mubr.bf16.gmra.mxu1 %v925_v54  ;;  %v578_v23 = vadd.f32 %v2978_v60, %v2886_v58  ;;  %v574_v60 = vadd.f32 %v2973_v46, %v2886_v58 }
 0x165   :  { %v671_v14 = vadd.f32 %v670_v2, %v3002_v61  ;;  %1523 = vmatprep.mubr.bf16.mxu0 %v960_v62  ;;  %v821_v5 = vmax.f32 %v669_v59, 0.0  ;;  %v972_v58 = vpack.c.bf16 %v908_v51, %v904_v42 }
 0x166   :  { %v674_v18 = vpop.f32.mrf.mxu1  ;;  %v900_v31 = vmax.f32 %v578_v23, 0.0  ;;  %v896_v32 = vmax.f32 %v574_v60, 0.0 }
 0x167   :  { %v822_v11 = vmax.f32 %v671_v14, 0.0  ;;  %v929_v26 = vpack.c.bf16 %v821_v5, %v817_v12  ;;  %v675_v27 = vadd.f32 %v674_v18, %v3011_v56 }
 0x168   :  { %v676_v13 = vpop.f32.mrf.mxu1  ;;  %v968_v7 = vpack.c.bf16 %v900_v31, %v896_v32 }
 0x169   :  { %v930_v15 = vpack.c.bf16 %v822_v11, %v818_v6  ;;  %v677_v16 = vadd.f32 %v676_v13, %v3002_v61  ;;  %v825_v37 = vmax.f32 %v675_v27, 0.0 }
 0x16a   :  { %v678_v34 = vpop.f32.mrf.mxu1 }
 0x16b   :  { %v679_v9 = vadd.f32 %v678_v34, %v3011_v56  ;;  %1636 = vmatprep.mubr.bf16.mxu1 %v930_v15  ;;  %v826_v10 = vmax.f32 %v677_v16, 0.0 }
 0x16c   :  { %v680_v28 = vpop.f32.mrf.mxu1  ;;  %1524 = vmatmul.mubr.bf16.gmra.mxu0 %v2951_v1  ;;  %1637 = vmatmul.mubr.bf16.gmra.mxu1 %v929_v26 }
 0x16d   :  { %v681_v29 = vadd.f32 %v680_v28, %v3002_v61  ;;  %1533 = vmatprep.mubr.bf16.mxu0 %v964_v20  ;;  %v829_v30 = vmax.f32 %v679_v9, 0.0 }
 0x16e   :  { %v684_v40 = vpop.f32.mrf.mxu1 }
 0x16f   :  { %v830_v35 = vmax.f32 %v681_v29, 0.0  ;;  %v933_v19 = vpack.c.bf16 %v829_v30, %v825_v37  ;;  %v685_v45 = vadd.f32 %v684_v40, %v3011_v56  ;;  %v2626_v37 = vld [vmem:[%s3494_s5] sm:$0xff]  }
 0x170   :  { %v686_v38 = vpop.f32.mrf.mxu1 }
 0x171   :  { %v934_v22 = vpack.c.bf16 %v830_v35, %v826_v10  ;;  %v687_v46 = vadd.f32 %v686_v38, %v3002_v61  ;;  %v833_v3 = vmax.f32 %v685_v45, 0.0 }
 0x172   :  { %v688_v1 = vpop.f32.mrf.mxu1 }
 0x173   :  { %v689_v44 = vadd.f32 %v688_v1, %v3011_v56  ;;  %1646 = vmatprep.mubr.bf16.mxu1 %v934_v22  ;;  %v834_v52 = vmax.f32 %v687_v46, 0.0 }
 0x174   :  { %v690_v48 = vpop.f32.mrf.mxu1  ;;  %1534 = vmatmul.mubr.bf16.gmra.mxu0 %v2963_v36  ;;  %1647 = vmatmul.mubr.bf16.gmra.mxu1 %v933_v19 }
 0x175   :  { %v691_v49 = vadd.f32 %v690_v48, %v3002_v61  ;;  %1543 = vmatprep.mubr.bf16.mxu0 %v968_v7  ;;  %v837_v57 = vmax.f32 %v689_v44, 0.0 }
 0x176   :  { %v694_v39 = vpop.f32.mrf.mxu1 }
 0x177   :  { %v838_v54 = vmax.f32 %v691_v49, 0.0  ;;  %v937_v62 = vpack.c.bf16 %v837_v57, %v833_v3  ;;  %v695_v14 = vadd.f32 %v694_v39, %v3011_v56 }
 0x178   :  { %v696_v0 = vpop.f32.mrf.mxu1 }
 0x179   :  { %v938_v59 = vpack.c.bf16 %v838_v54, %v834_v52  ;;  %v697_v36 = vadd.f32 %v696_v0, %v3002_v61  ;;  %v841_v13 = vmax.f32 %v695_v14, 0.0 }
 0x17a   :  { %v698_v63 = vpop.f32.mrf.mxu1 }
 0x17b   :  { %v699_v2 = vadd.f32 %v698_v63, %v3011_v56  ;;  %1656 = vmatprep.mubr.bf16.mxu1 %v938_v59  ;;  %v842_v11 = vmax.f32 %v697_v36, 0.0 }
 0x17c   :  { %v700_v5 = vpop.f32.mrf.mxu1  ;;  %1544 = vmatmul.mubr.bf16.gmra.mxu0 %v2981_v8  ;;  %1657 = vmatmul.mubr.bf16.gmra.mxu1 %v937_v62 }
 0x17d   :  { %v701_v18 = vadd.f32 %v700_v5, %v3002_v61  ;;  %1553 = vmatprep.mubr.bf16.mxu0 %v972_v58  ;;  %v845_v47 = vmax.f32 %v699_v2, 0.0 }
 0x17e   :  { %v704_v6 = vpop.f32.mrf.mxu1 }
 0x17f   :  { %v846_v12 = vmax.f32 %v701_v18, 0.0  ;;  %v941_v26 = vpack.c.bf16 %v845_v47, %v841_v13  ;;  %v705_v8 = vadd.f32 %v704_v6, %v3011_v56 }
 0x180   :  { %v706_v43 = vpop.f32.mrf.mxu1 }
 0x181   :  { %v942_v15 = vpack.c.bf16 %v846_v12, %v842_v11  ;;  %v707_v23 = vadd.f32 %v706_v43, %v3002_v61  ;;  %v849_v60 = vmax.f32 %v705_v8, 0.0 }
 0x182   :  { %v708_v34 = vpop.f32.mrf.mxu1 }
 0x183   :  { %v709_v16 = vadd.f32 %v708_v34, %v3011_v56  ;;  %1666 = vmatprep.mubr.bf16.mxu1 %v942_v15  ;;  %v850_v27 = vmax.f32 %v707_v23, 0.0 }
 0x184   :  { %v710_v9 = vpop.f32.mrf.mxu1  ;;  %1554 = vmatmul.mubr.bf16.gmra.mxu0 %v2999_v50  ;;  %1667 = vmatmul.mubr.bf16.gmra.mxu1 %v941_v26  ;;  %v2625_v50 = vld [vmem:[%s3494_s5 + $0x40] sm:$0xff]  }
 0x185   :  { %v711_v20 = vadd.f32 %v710_v9, %v3002_v61  ;;  %v853_v21 = vmax.f32 %v709_v16, 0.0  ;;  %2330 = vmatprep.subr.bf16.mxu0 %v2625_v50 }
 0x186   :  { %v714_v24 = vpop.f32.mrf.mxu1  ;;  %2331 = vmatpush3.bf16.msra.mxu0 %v2626_v37 }
 0x187   :  { %v854_v28 = vmax.f32 %v711_v20, 0.0  ;;  %v945_v40 = vpack.c.bf16 %v853_v21, %v849_v60  ;;  %v715_v38 = vadd.f32 %v714_v24, %v3011_v56 }
 0x188   :  { %v716_v29 = vpop.f32.mrf.mxu1 }
 0x189   :  { %v946_v30 = vpack.c.bf16 %v854_v28, %v850_v27  ;;  %v717_v10 = vadd.f32 %v716_v29, %v3002_v61  ;;  %v857_v44 = vmax.f32 %v715_v38, 0.0 }
 0x18a   :  { %v718_v31 = vpop.f32.mrf.mxu1 }
 0x18b   :  { %v719_v35 = vadd.f32 %v718_v31, %v3011_v56  ;;  %1676 = vmatprep.mubr.bf16.mxu1 %v946_v30  ;;  %v858_v41 = vmax.f32 %v717_v10, 0.0 }
 0x18c   :  { %v720_v32 = vpop.f32.mrf.mxu1  ;;  %1677 = vmatmul.mubr.bf16.gmra.mxu1 %v945_v40 }
 0x18d   :  { %v721_v22 = vadd.f32 %v720_v32, %v3002_v61  ;;  %v861_v19 = vmax.f32 %v719_v35, 0.0 }
 0x18e   :  { %v724_v1 = vpop.f32.mrf.mxu1 }
 0x18f   :  { %v862_v46 = vmax.f32 %v721_v22, 0.0  ;;  %v949_v48 = vpack.c.bf16 %v861_v19, %v857_v44  ;;  %v725_v39 = vadd.f32 %v724_v1, %v3011_v56 }
 0x190   :  { %v726_v7 = vpop.f32.mrf.mxu1 }
 0x191   :  { %v950_v45 = vpack.c.bf16 %v862_v46, %v858_v41  ;;  %v727_v49 = vadd.f32 %v726_v7, %v3002_v61  ;;  %v865_v59 = vmax.f32 %v725_v39, 0.0 }
 0x192   :  { %v728_v53 = vpop.f32.mrf.mxu1 }
 0x193   :  { %v729_v57 = vadd.f32 %v728_v53, %v3011_v56  ;;  %1686 = vmatprep.mubr.bf16.mxu1 %v950_v45  ;;  %v866_v0 = vmax.f32 %v727_v49, 0.0 }
 0x194   :  { %v730_v51 = vpop.f32.mrf.mxu1  ;;  %1687 = vmatmul.mubr.bf16.gmra.mxu1 %v949_v48 }
 0x195   :  { %v731_v52 = vadd.f32 %v730_v51, %v3002_v61  ;;  %v869_v54 = vmax.f32 %v729_v57, 0.0 }
 0x196   :  { %v734_v3 = vpop.f32.mrf.mxu1 }
 0x197   :  { %v870_v42 = vmax.f32 %v731_v52, 0.0  ;;  %v953_v36 = vpack.c.bf16 %v869_v54, %v865_v59  ;;  %v735_v4 = vadd.f32 %v734_v3, %v3011_v56 }
 0x198   :  { %v736_v62 = vpop.f32.mrf.mxu1 }
 0x199   :  { %v954_v63 = vpack.c.bf16 %v870_v42, %v866_v0  ;;  %v737_v58 = vadd.f32 %v736_v62, %v3002_v61  ;;  %v873_v12 = vmax.f32 %v735_v4, 0.0 }
 0x19a   :  { %v738_v2 = vpop.f32.mrf.mxu1 }
 0x19b   :  { %v739_v17 = vadd.f32 %v738_v2, %v3011_v56  ;;  %1696 = vmatprep.mubr.bf16.mxu1 %v954_v63  ;;  %v874_v6 = vmax.f32 %v737_v58, 0.0 }
 0x19c   :  { %v740_v14 = vpop.f32.mrf.mxu1  ;;  %1697 = vmatmul.mubr.bf16.gmra.mxu1 %v953_v36 }
 0x19d   :  { %v741_v5 = vadd.f32 %v740_v14, %v3002_v61  ;;  %v877_v18 = vmax.f32 %v739_v17, 0.0 }
 0x19e   :  { %v744_v47 = vpop.f32.mrf.mxu1 }
 0x19f   :  { %v878_v11 = vmax.f32 %v741_v5, 0.0  ;;  %v957_v15 = vpack.c.bf16 %v877_v18, %v873_v12  ;;  %v745_v16 = vadd.f32 %v744_v47, %v3011_v56 }
 0x1a0   :  { %v746_v13 = vpop.f32.mrf.mxu1 }
 0x1a1   :  { %v958_v43 = vpack.c.bf16 %v878_v11, %v874_v6  ;;  %v747_v34 = vadd.f32 %v746_v13, %v3002_v61  ;;  %v881_v28 = vmax.f32 %v745_v16, 0.0 }
 0x1a2   :  { %v748_v26 = vpop.f32.mrf.mxu1 }
 0x1a3   :  { %v749_v23 = vadd.f32 %v748_v26, %v3011_v56  ;;  %1706 = vmatprep.mubr.bf16.mxu1 %v958_v43  ;;  %v882_v24 = vmax.f32 %v747_v34, 0.0 }
 0x1a4   :  { %v750_v8 = vpop.f32.mrf.mxu1  ;;  %1707 = vmatmul.mubr.bf16.gmra.mxu1 %v957_v15 }
 0x1a5   :  { %v751_v9 = vadd.f32 %v750_v8, %v3002_v61  ;;  %v885_v20 = vmax.f32 %v749_v23, 0.0 }
 0x1a6   :  { %v754_v21 = vpop.f32.mrf.mxu1 }
 0x1a7   :  { %v886_v27 = vmax.f32 %v751_v9, 0.0  ;;  %v961_v30 = vpack.c.bf16 %v885_v20, %v881_v28  ;;  %v755_v35 = vadd.f32 %v754_v21, %v3011_v56 }
 0x1a8   :  { %v756_v60 = vpop.f32.mrf.mxu1 }
 0x1a9   :  { %v962_v29 = vpack.c.bf16 %v886_v27, %v882_v24  ;;  %v757_v31 = vadd.f32 %v756_v60, %v3002_v61  ;;  %v889_v1 = vmax.f32 %v755_v35, 0.0 }
 0x1aa   :  { %v758_v40 = vpop.f32.mrf.mxu1 }
 0x1ab   :  { %v759_v10 = vadd.f32 %v758_v40, %v3011_v56  ;;  %1716 = vmatprep.mubr.bf16.mxu1 %v962_v29  ;;  %v890_v22 = vmax.f32 %v757_v31, 0.0 }
 0x1ac   :  { %v760_v50 = vpop.f32.mrf.mxu1  ;;  %1717 = vmatmul.mubr.bf16.gmra.mxu1 %v961_v30 }
 0x1ad   :  { %v761_v37 = vadd.f32 %v760_v50, %v3002_v61  ;;  %v893_v38 = vmax.f32 %v759_v10, 0.0 }
 0x1ae   :  { %v764_v32 = vpop.f32.mrf.mxu1 }
 0x1af   :  { %v894_v19 = vmax.f32 %v761_v37, 0.0  ;;  %v965_v44 = vpack.c.bf16 %v893_v38, %v889_v1  ;;  %v765_v53 = vadd.f32 %v764_v32, %v3011_v56 }
 0x1b0   :  { %v766_v41 = vpop.f32.mrf.mxu1 }
 0x1b1   :  { %v966_v46 = vpack.c.bf16 %v894_v19, %v890_v22  ;;  %v767_v45 = vadd.f32 %v766_v41, %v3002_v61  ;;  %v897_v3 = vmax.f32 %v765_v53, 0.0  ;;  %v1039_v19 = vld [vmem:[%s3493_s4] sm:$0x3] }
 0x1b2   :  { %v768_v7 = vpop.f32.mrf.mxu1 }
 0x1b3   :  { %v769_v48 = vadd.f32 %v768_v7, %v3011_v56  ;;  %1726 = vmatprep.mubr.bf16.mxu1 %v966_v46  ;;  %v898_v52 = vmax.f32 %v767_v45, 0.0  ;;  %v3196_v46 = vrot.slane %v1039_v19, %v123_v33 }
 0x1b4   :  { %v770_v49 = vpop.f32.mrf.mxu1  ;;  %1727 = vmatmul.mubr.bf16.gmra.mxu1 %v965_v44  ;;  %v3200_v44 = vrot.slane %v1039_v19, %v127_v55 }
 0x1b5   :  { %v771_v57 = vadd.f32 %v770_v49, %v3002_v61  ;;  %v901_v39 = vmax.f32 %v769_v48, 0.0 }
 0x1b6   :  { %v774_v51 = vpop.f32.mrf.mxu1 }
 0x1b7   :  { %v902_v54 = vmax.f32 %v771_v57, 0.0  ;;  %v969_v59 = vpack.c.bf16 %v901_v39, %v897_v3  ;;  %v775_v2 = vadd.f32 %v774_v51, %v3011_v56 }
 0x1b8   :  { %v776_v0 = vpop.f32.mrf.mxu1 }
 0x1b9   :  { %v970_v42 = vpack.c.bf16 %v902_v54, %v898_v52  ;;  %v777_v63 = vadd.f32 %v776_v0, %v3002_v61  ;;  %v905_v18 = vmax.f32 %v775_v2, 0.0 }
 0x1ba   :  { %v778_v62 = vpop.f32.mrf.mxu1 }
 0x1bb   :  { %v779_v36 = vadd.f32 %v778_v62, %v3011_v56  ;;  %1736 = vmatprep.mubr.bf16.mxu1 %v970_v42  ;;  %v906_v14 = vmax.f32 %v777_v63, 0.0 }
 0x1bc   :  { %v780_v58 = vpop.f32.mrf.mxu1  ;;  %1737 = vmatmul.mubr.bf16.gmra.mxu1 %v969_v59 }
 0x1bd   :  { %v781_v17 = vadd.f32 %v780_v58, %v3002_v61  ;;  %v909_v4 = vmax.f32 %v779_v36, 0.0 }
 0x1bf   :  { %v910_v5 = vmax.f32 %v781_v17, 0.0  ;;  %v973_v6 = vpack.c.bf16 %v909_v4, %v905_v18 }
 0x1c1   :  { %v974_v47 = vpack.c.bf16 %v910_v5, %v906_v14 }
 0x1c3   :  { %1746 = vmatprep.mubr.bf16.mxu1 %v974_v47 }
 0x1c4   :  { %1747 = vmatmul.mubr.bf16.gmra.mxu1 %v973_v6 }
 0x1cc   :  { %v1405_v11 = vpop.f32.mrf.mxu0 }
 0x1cd   :  { %v1406_v39 = vadd.f32 %v1405_v11, %v3196_v46 }
 0x1ce   :  { %v1407_v12 = vpop.f32.mrf.mxu0 }
 0x1cf   :  { %v1408_v49 = vadd.f32 %v1407_v12, %v3200_v44 }
 0x1d0   :  { %v1409_v13 = vpop.f32.mrf.mxu0 }
 0x1d1   :  { %v1410_v57 = vadd.f32 %v1409_v13, %v3196_v46 }
 0x1d2   :  { %v1411_v43 = vpop.f32.mrf.mxu0 }
 0x1d3   :  { %v1412_v33 = vadd.f32 %v1411_v43, %v3200_v44 }
 0x1d4   :  { %v1415_v15 = vpop.f32.mrf.mxu0 }
 0x1d5   :  { %v1416_v5 = vadd.f32 %v1415_v15, %v3196_v46 }
 0x1d6   :  { %v1417_v26 = vpop.f32.mrf.mxu0 }
 0x1d7   :  { %v1418_v17 = vadd.f32 %v1417_v26, %v3200_v44 }
 0x1d8   :  { %v1419_v34 = vpop.f32.mrf.mxu0 }
 0x1d9   :  { %v1420_v4 = vadd.f32 %v1419_v34, %v3196_v46 }
 0x1da   :  { %v1421_v56 = vpop.f32.mrf.mxu0 }
 0x1db   :  { %v1422_v6 = vadd.f32 %v1421_v56, %v3200_v44 }
 0x1dc   :  { %v3143_v23 = vpop.f32.mrf.mxu0 }
 0x1de   :  { %v3145_v16 = vpop.f32.mrf.mxu0 }
 0x1df   :  { %v1428_v56 = vadd.f32 %v3145_v16, %v3200_v44 }
 0x1e0   :  { %v3147_v61 = vpop.f32.mrf.mxu0 }
 0x1e2   :  { %v3149_v8 = vpop.f32.mrf.mxu0 }
 0x1e4   :  { %v3151_v9 = vpop.f32.mrf.mxu0 }
 0x1e6   :  { %v3153_v20 = vpop.f32.mrf.mxu0 }
 0x1e8   :  { %v3155_v21 = vpop.f32.mrf.mxu0 }
 0x1ea   :  { %v3157_v24 = vpop.f32.mrf.mxu0 }
 0x1ec   :  { %v3159_v27 = vpop.f32.mrf.mxu0 }
 0x1ee   :  { %v3161_v28 = vpop.f32.mrf.mxu0 }
 0x1f0   :  { %v3163_v60 = vpop.f32.mrf.mxu0 }
 0x1f2   :  { %v3165_v29 = vpop.f32.mrf.mxu0 }
 0x1f4   :  { %v3167_v30 = vpop.f32.mrf.mxu0 }
 0x1f6   :  { %v3169_v40 = vpop.f32.mrf.mxu0 }
 0x1f8   :  { %v3171_v31 = vpop.f32.mrf.mxu0 }
 0x1fa   :  { %v3173_v10 = vpop.f32.mrf.mxu0 }
 0x1fc   :  { %v3175_v35 = vpop.f32.mrf.mxu0 }
 0x1fe   :  { %v3177_v50 = vpop.f32.mrf.mxu0 }
 0x200   :  { %v3179_v37 = vpop.f32.mrf.mxu0 }
 0x202   :  { %v3181_v38 = vpop.f32.mrf.mxu0 }
 0x204   :  { %v3183_v32 = vpop.f32.mrf.mxu0 }
 0x206   :  { %v3185_v22 = vpop.f32.mrf.mxu0 }
 0x208   :  { %v3190_v1 = vpop.f32.mrf.mxu0 }
 0x20a   :  { %v3192_v41 = vpop.f32.mrf.mxu0 }
 0x20c   :  { %v3202_v7 = vpop.f32.mrf.mxu0  ;;  %v1598_v45 = vpop.f32.mrf.mxu1 }
 0x20d   :  { %v1599_v25 = vadd.f32 %v1598_v45, %v1406_v39 }
 0x20e   :  { %v3204_v48 = vpop.f32.mrf.mxu0  ;;  %v1600_v53 = vpop.f32.mrf.mxu1 }
 0x20f   :  { %v1601_v52 = vadd.f32 %v1600_v53, %v1408_v49  ;;  %v1757_v36 = vmax.f32 %v1599_v25, 0.0 }
 0x210   :  { %v1602_v51 = vpop.f32.mrf.mxu1  ;;  %v3210_v55 = vpop.f32.mrf.mxu0 }
 0x211   :  { %v1603_v54 = vadd.f32 %v1602_v51, %v1410_v57  ;;  %v1758_v62 = vmax.f32 %v1601_v52, 0.0  ;;  %v1430_v51 = vadd.f32 %v3147_v61, %v3196_v46  ;;  %v1426_v52 = vadd.f32 %v3143_v23, %v3196_v46 }
 0x212   :  { %v1604_v3 = vpop.f32.mrf.mxu1  ;;  %v3212_v2 = vpop.f32.mrf.mxu0 }
 0x213   :  { %v1605_v0 = vadd.f32 %v1604_v3, %v1412_v33  ;;  %v1759_v42 = vmax.f32 %v1603_v54, 0.0  ;;  %v1432_v3 = vadd.f32 %v3149_v8, %v3200_v44  ;;  %v1438_v8 = vadd.f32 %v3153_v20, %v3200_v44 }
 0x214   :  { %v1608_v59 = vpop.f32.mrf.mxu1  ;;  %v3218_v13 = vpop.f32.mrf.mxu0 }
 0x215   :  { %v1760_v63 = vmax.f32 %v1605_v0, 0.0  ;;  %v1821_v18 = vpack.c.bf16 %v1759_v42, %v1757_v36  ;;  %v1609_v43 = vadd.f32 %v1608_v59, %v1416_v5  ;;  %v1440_v5 = vadd.f32 %v3155_v21, %v3196_v46 }
 0x216   :  { %v1610_v58 = vpop.f32.mrf.mxu1  ;;  %v3220_v39 = vpop.f32.mrf.mxu0 }
 0x217   :  { %v1822_v14 = vpack.c.bf16 %v1760_v63, %v1758_v62  ;;  %v1611_v11 = vadd.f32 %v1610_v58, %v1418_v17  ;;  %v1761_v57 = vmax.f32 %v1609_v43, 0.0 }
 0x218   :  { %v1612_v47 = vpop.f32.mrf.mxu1  ;;  %v3230_v59 = vpop.f32.mrf.mxu0 }
 0x219   :  { %v1613_v12 = vadd.f32 %v1612_v47, %v1420_v4  ;;  %2020 = vmatprep.mubr.bf16.mxu0 %v1822_v14  ;;  %v1762_v49 = vmax.f32 %v1611_v11, 0.0  ;;  %v1436_v47 = vadd.f32 %v3151_v9, %v3196_v46 }
 0x21a   :  { %v1614_v19 = vpop.f32.mrf.mxu1  ;;  %2021 = vmatmul.mubr.bf16.vlgmr.msra.gmra.mxu0 %v1821_v18  ;;  %v3232_v4 = vpop.f32.mrf.mxu0 }
 0x21b   :  { %v1615_v45 = vadd.f32 %v1614_v19, %v1422_v6  ;;  %v1763_v53 = vmax.f32 %v1613_v12, 0.0  ;;  %v1442_v12 = vadd.f32 %v3157_v24, %v3200_v44  ;;  %v1448_v24 = vadd.f32 %v3161_v28, %v3200_v44 }
 0x21c   :  { %v1618_v26 = vpop.f32.mrf.mxu1 }
 0x21d   :  { %v1764_v34 = vmax.f32 %v1615_v45, 0.0  ;;  %v1823_v54 = vpack.c.bf16 %v1763_v53, %v1761_v57  ;;  %v1619_v62 = vadd.f32 %v1618_v26, %v1426_v52  ;;  %v3242_v45 = vpop.f32.mrf.mxu0  ;;  %v1446_v52 = vadd.f32 %v3159_v27, %v3196_v46 }
 0x21e   :  { %v1620_v15 = vpop.f32.mrf.mxu1 }
 0x21f   :  { %v1824_v33 = vpack.c.bf16 %v1764_v34, %v1762_v49  ;;  %v1621_v0 = vadd.f32 %v1620_v15, %v1428_v56  ;;  %v1765_v23 = vmax.f32 %v1619_v62, 0.0  ;;  %v3244_v15 = vpop.f32.mrf.mxu0 }
 0x220   :  { %v1622_v25 = vpop.f32.mrf.mxu1 }
 0x221   :  { %v1623_v42 = vadd.f32 %v1622_v25, %v1430_v51  ;;  %2028 = vmatprep.mubr.bf16.mxu0 %v1824_v33  ;;  %v1766_v58 = vmax.f32 %v1621_v0, 0.0  ;;  %v1450_v51 = vadd.f32 %v3163_v60, %v3196_v46  ;;  %v3254_v62 = vpop.f32.mrf.mxu0 }
 0x222   :  { %v1624_v63 = vpop.f32.mrf.mxu1  ;;  %2029 = vmatmul.mubr.bf16.gmra.mxu0 %v1823_v54 }
 0x223   :  { %v1625_v16 = vadd.f32 %v1624_v63, %v1432_v3  ;;  %v1767_v36 = vmax.f32 %v1623_v42, 0.0  ;;  %v1452_v3 = vadd.f32 %v3165_v29, %v3200_v44  ;;  %v1458_v29 = vadd.f32 %v3169_v40, %v3200_v44 }
 0x224   :  { %v1628_v61 = vpop.f32.mrf.mxu1 }
 0x225   :  { %v1768_v17 = vmax.f32 %v1625_v16, 0.0  ;;  %v1825_v6 = vpack.c.bf16 %v1767_v36, %v1765_v23  ;;  %v1629_v53 = vadd.f32 %v1628_v61, %v1436_v47 }
 0x226   :  { %v1630_v14 = vpop.f32.mrf.mxu1 }
 0x227   :  { %v1826_v18 = vpack.c.bf16 %v1768_v17, %v1766_v58  ;;  %v1631_v43 = vadd.f32 %v1630_v14, %v1438_v8  ;;  %v1769_v9 = vmax.f32 %v1629_v53, 0.0  ;;  %v3256_v17 = vpop.f32.mrf.mxu0  ;;  %v1460_v14 = vadd.f32 %v3171_v31, %v3196_v46 }
 0x228   :  { %v1632_v11 = vpop.f32.mrf.mxu1 }
 0x229   :  { %v1633_v19 = vadd.f32 %v1632_v11, %v1440_v5  ;;  %2036 = vmatprep.mubr.bf16.mxu0 %v1826_v18  ;;  %v1770_v34 = vmax.f32 %v1631_v43, 0.0  ;;  %v1456_v5 = vadd.f32 %v3167_v30, %v3196_v46  ;;  %v3266_v43 = vpop.f32.mrf.mxu0 }
 0x22a   :  { %v1634_v26 = vpop.f32.mrf.mxu1  ;;  %2037 = vmatmul.mubr.bf16.gmra.mxu0 %v1825_v6  ;;  %v1462_v6 = vadd.f32 %v3173_v10, %v3200_v44  ;;  %v1468_v10 = vadd.f32 %v3177_v50, %v3200_v44 }
 0x22b   :  { %v1635_v20 = vadd.f32 %v1634_v26, %v1442_v12  ;;  %v1771_v49 = vmax.f32 %v1633_v19, 0.0 }
 0x22c   :  { %v1638_v21 = vpop.f32.mrf.mxu1 }
 0x22d   :  { %v1772_v57 = vmax.f32 %v1635_v20, 0.0  ;;  %v1827_v54 = vpack.c.bf16 %v1771_v49, %v1769_v9  ;;  %v1639_v63 = vadd.f32 %v1638_v21, %v1446_v52  ;;  %v3268_v21 = vpop.f32.mrf.mxu0 }
 0x22e   :  { %v1640_v56 = vpop.f32.mrf.mxu1 }
 0x22f   :  { %v1828_v33 = vpack.c.bf16 %v1772_v57, %v1770_v34  ;;  %v1641_v0 = vadd.f32 %v1640_v56, %v1448_v24  ;;  %v1773_v27 = vmax.f32 %v1639_v63, 0.0  ;;  %v1470_v57 = vadd.f32 %v3179_v37, %v3196_v46 }
 0x230   :  { %v1642_v25 = vpop.f32.mrf.mxu1  ;;  %v1466_v56 = vadd.f32 %v3175_v35, %v3196_v46 }
 0x231   :  { %v1643_v42 = vadd.f32 %v1642_v25, %v1450_v51  ;;  %2044 = vmatprep.mubr.bf16.mxu0 %v1828_v33  ;;  %v1774_v61 = vmax.f32 %v1641_v0, 0.0  ;;  %v1472_v33 = vadd.f32 %v3181_v38, %v3200_v44  ;;  %v3278_v25 = vpop.f32.mrf.mxu0  ;;  %v1478_v38 = vadd.f32 %v3185_v22, %v3200_v44 }
 0x232   :  { %v1644_v16 = vpop.f32.mrf.mxu1  ;;  %2045 = vmatmul.mubr.bf16.gmra.mxu0 %v1827_v54 }
 0x233   :  { %v1645_v28 = vadd.f32 %v1644_v16, %v1452_v3  ;;  %v1775_v36 = vmax.f32 %v1643_v42, 0.0 }
 0x234   :  { %v1648_v60 = vpop.f32.mrf.mxu1 }
 0x235   :  { %v1776_v58 = vmax.f32 %v1645_v28, 0.0  ;;  %v1829_v18 = vpack.c.bf16 %v1775_v36, %v1773_v27  ;;  %v1649_v19 = vadd.f32 %v1648_v60, %v1456_v5  ;;  %v3280_v28 = vpop.f32.mrf.mxu0  ;;  %v1480_v60 = vadd.f32 %v3190_v1, %v3196_v46 }
 0x236   :  { %v1650_v23 = vpop.f32.mrf.mxu1 }
 0x237   :  { %v1830_v8 = vpack.c.bf16 %v1776_v58, %v1774_v61  ;;  %v1651_v11 = vadd.f32 %v1650_v23, %v1458_v29  ;;  %v1777_v30 = vmax.f32 %v1649_v19, 0.0  ;;  %v1476_v58 = vadd.f32 %v3183_v32, %v3196_v46  ;;  %v3290_v5 = vpop.f32.mrf.mxu0 }
 0x238   :  { %v1652_v47 = vpop.f32.mrf.mxu1  ;;  %v1482_v29 = vadd.f32 %v3192_v41, %v3200_v44  ;;  %v1488_v41 = vadd.f32 %v3204_v48, %v3200_v44 }
 0x239   :  { %v1653_v12 = vadd.f32 %v1652_v47, %v1460_v14  ;;  %2052 = vmatprep.mubr.bf16.mxu0 %v1830_v8  ;;  %v1778_v20 = vmax.f32 %v1651_v11, 0.0  ;;  %v3292_v19 = vpop.f32.mrf.mxu0 }
 0x23a   :  { %v1654_v53 = vpop.f32.mrf.mxu1  ;;  %2053 = vmatmul.mubr.bf16.gmra.mxu0 %v1829_v18 }
 0x23b   :  { %v1655_v40 = vadd.f32 %v1654_v53, %v1462_v6  ;;  %v1779_v26 = vmax.f32 %v1653_v12, 0.0 }
 0x23c   :  { %v1658_v31 = vpop.f32.mrf.mxu1 }
 0x23d   :  { %v1780_v49 = vmax.f32 %v1655_v40, 0.0  ;;  %v1831_v24 = vpack.c.bf16 %v1779_v26, %v1777_v30  ;;  %v1659_v3 = vadd.f32 %v1658_v31, %v1466_v56  ;;  %v1490_v40 = vadd.f32 %v3210_v55, %v3196_v46 }
 0x23e   :  { %v1660_v34 = vpop.f32.mrf.mxu1  ;;  %v1486_v31 = vadd.f32 %v3202_v7, %v3196_v46  ;;  %v1492_v30 = vadd.f32 %v3212_v2, %v3200_v44  ;;  %v1498_v2 = vadd.f32 %v3220_v39, %v3200_v44 }
 0x23f   :  { %v1832_v9 = vpack.c.bf16 %v1780_v49, %v1778_v20  ;;  %v1661_v52 = vadd.f32 %v1660_v34, %v1468_v10  ;;  %v1781_v35 = vmax.f32 %v1659_v3, 0.0  ;;  %v1500_v3 = vadd.f32 %v3230_v59, %v3196_v46 }
 0x240   :  { %v1662_v51 = vpop.f32.mrf.mxu1 }
 0x241   :  { %v1663_v54 = vadd.f32 %v1662_v51, %v1470_v57  ;;  %2060 = vmatprep.mubr.bf16.mxu0 %v1832_v9  ;;  %v1782_v63 = vmax.f32 %v1661_v52, 0.0  ;;  %v3302_v57 = vpop.f32.mrf.mxu0 }
 0x242   :  { %v1664_v0 = vpop.f32.mrf.mxu1  ;;  %2061 = vmatmul.mubr.bf16.gmra.mxu0 %v1831_v24 }
 0x243   :  { %v1665_v50 = vadd.f32 %v1664_v0, %v1472_v33  ;;  %v1783_v42 = vmax.f32 %v1663_v54, 0.0  ;;  %v3304_v52 = vpop.f32.mrf.mxu0 }
 0x244   :  { %v1668_v37 = vpop.f32.mrf.mxu1 }
 0x245   :  { %v1784_v16 = vmax.f32 %v1665_v50, 0.0  ;;  %v1833_v27 = vpack.c.bf16 %v1783_v42, %v1781_v35  ;;  %v1669_v18 = vadd.f32 %v1668_v37, %v1476_v58  ;;  %v1496_v50 = vadd.f32 %v3218_v13, %v3196_v46 }
 0x246   :  { %v1670_v36 = vpop.f32.mrf.mxu1 }
 0x247   :  { %v1834_v61 = vpack.c.bf16 %v1784_v16, %v1782_v63  ;;  %v1671_v14 = vadd.f32 %v1670_v36, %v1478_v38  ;;  %v1785_v32 = vmax.f32 %v1669_v18, 0.0  ;;  %v1502_v63 = vadd.f32 %v3232_v4, %v3200_v44  ;;  %v3314_v36 = vpop.f32.mrf.mxu0 }
 0x248   :  { %v1672_v23 = vpop.f32.mrf.mxu1  ;;  %v1508_v4 = vadd.f32 %v3244_v15, %v3200_v44  ;;  %v1506_v18 = vadd.f32 %v3242_v45, %v3196_v46 }
 0x249   :  { %v1673_v8 = vadd.f32 %v1672_v23, %v1480_v60  ;;  %2068 = vmatprep.mubr.bf16.mxu0 %v1834_v61  ;;  %v1786_v11 = vmax.f32 %v1671_v14, 0.0  ;;  %v3316_v23 = vpop.f32.mrf.mxu0  ;;  %v1510_v14 = vadd.f32 %v3254_v62, %v3196_v46 }
 0x24a   :  { %v1674_v47 = vpop.f32.mrf.mxu1  ;;  %2069 = vmatmul.mubr.bf16.gmra.mxu0 %v1833_v27 }
 0x24b   :  { %v1675_v22 = vadd.f32 %v1674_v47, %v1482_v29  ;;  %v1787_v6 = vmax.f32 %v1673_v8, 0.0 }
 0x24c   :  { %v1678_v1 = vpop.f32.mrf.mxu1 }
 0x24d   :  { %v1788_v12 = vmax.f32 %v1675_v22, 0.0  ;;  %v1835_v20 = vpack.c.bf16 %v1787_v6, %v1785_v32  ;;  %v1679_v9 = vadd.f32 %v1678_v1, %v1486_v31  ;;  %v1512_v6 = vadd.f32 %v3256_v17, %v3200_v44 }
 0x24e   :  { %v1680_v53 = vpop.f32.mrf.mxu1  ;;  %v1520_v17 = vadd.f32 %v3278_v25, %v3196_v46 }
 0x24f   :  { %v1836_v26 = vpack.c.bf16 %v1788_v12, %v1786_v11  ;;  %v1681_v34 = vadd.f32 %v1680_v53, %v1488_v41  ;;  %v1789_v7 = vmax.f32 %v1679_v9, 0.0  ;;  %v1539_v12 = vpop.f32.mrf.mxu0 }
 0x250   :  { %v1682_v49 = vpop.f32.mrf.mxu1 }
 0x251   :  { %v1683_v10 = vadd.f32 %v1682_v49, %v1490_v40  ;;  %2076 = vmatprep.mubr.bf16.mxu0 %v1836_v26  ;;  %v1790_v51 = vmax.f32 %v1681_v34, 0.0  ;;  %v1541_v31 = vpop.f32.mrf.mxu0  ;;  %v1518_v49 = vadd.f32 %v3268_v21, %v3200_v44  ;;  %v1516_v34 = vadd.f32 %v3266_v43, %v3196_v46 }
 0x252   :  { %v1684_v56 = vpop.f32.mrf.mxu1  ;;  %2077 = vmatmul.mubr.bf16.gmra.mxu0 %v1835_v20 }
 0x253   :  { %v1685_v48 = vadd.f32 %v1684_v56, %v1492_v30  ;;  %v1791_v24 = vmax.f32 %v1683_v10, 0.0  ;;  %v1522_v56 = vadd.f32 %v3280_v28, %v3200_v44  ;;  %v1530_v28 = vadd.f32 %v3302_v57, %v3196_v46 }
 0x254   :  { %v1688_v55 = vpop.f32.mrf.mxu1 }
 0x255   :  { %v1792_v33 = vmax.f32 %v1685_v48, 0.0  ;;  %v1837_v42 = vpack.c.bf16 %v1791_v24, %v1789_v7  ;;  %v1689_v38 = vadd.f32 %v1688_v55, %v1496_v50  ;;  %v1545_v55 = vpop.f32.mrf.mxu0  ;;  %v1528_v50 = vadd.f32 %v3292_v19, %v3200_v44 }
 0x256   :  { %v1690_v54 = vpop.f32.mrf.mxu1 }
 0x257   :  { %v1838_v0 = vpack.c.bf16 %v1792_v33, %v1790_v51  ;;  %v1691_v16 = vadd.f32 %v1690_v54, %v1498_v2  ;;  %v1793_v13 = vmax.f32 %v1689_v38, 0.0 }
 0x258   :  { %v1692_v37 = vpop.f32.mrf.mxu1 }
 0x259   :  { %v1693_v35 = vadd.f32 %v1692_v37, %v1500_v3  ;;  %2084 = vmatprep.mubr.bf16.mxu0 %v1838_v0  ;;  %v1794_v58 = vmax.f32 %v1691_v16, 0.0  ;;  %v1547_v3 = vpop.f32.mrf.mxu0  ;;  %v1526_v37 = vadd.f32 %v3290_v5, %v3196_v46 }
 0x25a   :  { %v1694_v60 = vpop.f32.mrf.mxu1  ;;  %2085 = vmatmul.mubr.bf16.gmra.mxu0 %v1837_v42 }
 0x25b   :  { %v1695_v39 = vadd.f32 %v1694_v60, %v1502_v63  ;;  %v1795_v61 = vmax.f32 %v1693_v35, 0.0  ;;  %v1532_v35 = vadd.f32 %v3304_v52, %v3200_v44  ;;  %v1540_v52 = vadd.f32 %v1539_v12, %v3196_v46 }
 0x25c   :  { %v1698_v59 = vpop.f32.mrf.mxu1 }
 0x25d   :  { %v1796_v27 = vmax.f32 %v1695_v39, 0.0  ;;  %v1839_v47 = vpack.c.bf16 %v1795_v61, %v1793_v13  ;;  %v1699_v32 = vadd.f32 %v1698_v59, %v1506_v18  ;;  %v1549_v39 = vpop.f32.mrf.mxu0  ;;  %v1536_v18 = vadd.f32 %v3314_v36, %v3196_v46 }
 0x25e   :  { %v1700_v29 = vpop.f32.mrf.mxu1  ;;  %v1548_v36 = vadd.f32 %v1547_v3, %v3200_v44 }
 0x25f   :  { %v1840_v8 = vpack.c.bf16 %v1796_v27, %v1794_v58  ;;  %v1701_v1 = vadd.f32 %v1700_v29, %v1508_v4  ;;  %v1797_v20 = vmax.f32 %v1699_v32, 0.0  ;;  %v1551_v29 = vpop.f32.mrf.mxu0 }
 0x260   :  { %v1702_v22 = vpop.f32.mrf.mxu1 }
 0x261   :  { %v1703_v11 = vadd.f32 %v1702_v22, %v1510_v14  ;;  %2092 = vmatprep.mubr.bf16.mxu0 %v1840_v8  ;;  %v1798_v62 = vmax.f32 %v1701_v1, 0.0  ;;  %v1538_v14 = vadd.f32 %v3316_v23, %v3200_v44  ;;  %v1555_v32 = vpop.f32.mrf.mxu0 }
 0x262   :  { %v1704_v53 = vpop.f32.mrf.mxu1  ;;  %2093 = vmatmul.mubr.bf16.gmra.mxu0 %v1839_v47 }
 0x263   :  { %v1705_v15 = vadd.f32 %v1704_v53, %v1512_v6  ;;  %v1799_v41 = vmax.f32 %v1703_v11, 0.0  ;;  %v1542_v6 = vadd.f32 %v1541_v31, %v3200_v44 }
 0x264   :  { %v1708_v40 = vpop.f32.mrf.mxu1 }
 0x265   :  { %v1800_v26 = vmax.f32 %v1705_v15, 0.0  ;;  %v1841_v10 = vpack.c.bf16 %v1799_v41, %v1797_v20  ;;  %v1709_v51 = vadd.f32 %v1708_v40, %v1516_v34 }
 0x266   :  { %v1710_v45 = vpop.f32.mrf.mxu1 }
 0x267   :  { %v1842_v30 = vpack.c.bf16 %v1800_v26, %v1798_v62  ;;  %v1711_v48 = vadd.f32 %v1710_v45, %v1518_v49  ;;  %v1801_v0 = vmax.f32 %v1709_v51, 0.0  ;;  %v1557_v26 = vpop.f32.mrf.mxu0  ;;  %v1550_v49 = vadd.f32 %v1549_v39, %v3196_v46 }
 0x268   :  { %v1712_v9 = vpop.f32.mrf.mxu1 }
 0x269   :  { %v1713_v24 = vadd.f32 %v1712_v9, %v1520_v17  ;;  %2100 = vmatprep.mubr.bf16.mxu0 %v1842_v30  ;;  %v1802_v25 = vmax.f32 %v1711_v48, 0.0  ;;  %v1546_v17 = vadd.f32 %v1545_v55, %v3196_v46  ;;  %v1559_v48 = vpop.f32.mrf.mxu0  ;;  %v1558_v55 = vadd.f32 %v1557_v26, %v3200_v44 }
 0x26a   :  { %v1714_v33 = vpop.f32.mrf.mxu1  ;;  %2101 = vmatmul.mubr.bf16.gmra.mxu0 %v1841_v10  ;;  %v1552_v10 = vadd.f32 %v1551_v29, %v3200_v44 }
 0x26b   :  { %v1715_v21 = vadd.f32 %v1714_v33, %v1522_v56  ;;  %v1803_v7 = vmax.f32 %v1713_v24, 0.0 }
 0x26c   :  { %v1718_v54 = vpop.f32.mrf.mxu1 }
 0x26d   :  { %v1804_v2 = vmax.f32 %v1715_v21, 0.0  ;;  %v1843_v63 = vpack.c.bf16 %v1803_v7, %v1801_v0  ;;  %v1719_v61 = vadd.f32 %v1718_v54, %v1526_v37 }
 0x26e   :  { %v1720_v43 = vpop.f32.mrf.mxu1 }
 0x26f   :  { %v1844_v42 = vpack.c.bf16 %v1804_v2, %v1802_v25  ;;  %v1721_v38 = vadd.f32 %v1720_v43, %v1528_v50  ;;  %v1805_v4 = vmax.f32 %v1719_v61, 0.0  ;;  %v1561_v2 = vpop.f32.mrf.mxu0  ;;  %v1560_v43 = vadd.f32 %v1559_v48, %v3196_v46 }
 0x270   :  { %v1722_v16 = vpop.f32.mrf.mxu1 }
 0x271   :  { %v1723_v60 = vadd.f32 %v1722_v16, %v1530_v28  ;;  %2108 = vmatprep.mubr.bf16.mxu0 %v1844_v42  ;;  %v1806_v57 = vmax.f32 %v1721_v38, 0.0  ;;  %v1556_v28 = vadd.f32 %v1555_v32, %v3196_v46 }
 0x272   :  { %v1724_v59 = vpop.f32.mrf.mxu1  ;;  %2109 = vmatmul.mubr.bf16.gmra.mxu0 %v1843_v63  ;;  %v1562_v63 = vadd.f32 %v1561_v2, %v3200_v44  ;;  %v3359_v44 = vld [vmem:[%s3495_s6] ss:$0 sm:$0xff] }
 0x273   :  { %v1725_v19 = vadd.f32 %v1724_v59, %v1532_v35  ;;  %v1807_v58 = vmax.f32 %v1723_v60, 0.0 }
 0x274   :  { %v1728_v27 = vpop.f32.mrf.mxu1 }
 0x275   :  { %v1808_v13 = vmax.f32 %v1725_v19, 0.0  ;;  %v1845_v47 = vpack.c.bf16 %v1807_v58, %v1805_v4  ;;  %v1729_v53 = vadd.f32 %v1728_v27, %v1536_v18 }
 0x276   :  { %v1730_v5 = vpop.f32.mrf.mxu1 }
 0x277   :  { %v1846_v8 = vpack.c.bf16 %v1808_v13, %v1806_v57  ;;  %v1731_v1 = vadd.f32 %v1730_v5, %v1538_v14  ;;  %v1809_v20 = vmax.f32 %v1729_v53, 0.0 }
 0x278   :  { %v1732_v22 = vpop.f32.mrf.mxu1 }
 0x279   :  { %v1733_v11 = vadd.f32 %v1732_v22, %v1540_v52  ;;  %2116 = vmatprep.mubr.bf16.mxu0 %v1846_v8  ;;  %v1810_v62 = vmax.f32 %v1731_v1, 0.0 }
 0x27a   :  { %v1734_v15 = vpop.f32.mrf.mxu1  ;;  %2117 = vmatmul.mubr.bf16.gmra.mxu0 %v1845_v47 }
 0x27b   :  { %v1735_v41 = vadd.f32 %v1734_v15, %v1542_v6  ;;  %v1811_v40 = vmax.f32 %v1733_v11, 0.0 }
 0x27c   :  { %v1738_v23 = vpop.f32.mrf.mxu1 }
 0x27d   :  { %v1812_v12 = vmax.f32 %v1735_v41, 0.0  ;;  %v1847_v30 = vpack.c.bf16 %v1811_v40, %v1809_v20  ;;  %v1739_v24 = vadd.f32 %v1738_v23, %v1546_v17 }
 0x27e   :  { %v1740_v45 = vpop.f32.mrf.mxu1 }
 0x27f   :  { %v1848_v31 = vpack.c.bf16 %v1812_v12, %v1810_v62  ;;  %v1741_v9 = vadd.f32 %v1740_v45, %v1548_v36  ;;  %v1813_v3 = vmax.f32 %v1739_v24, 0.0 }
 0x280   :  { %v1742_v34 = vpop.f32.mrf.mxu1 }
 0x281   :  { %v1743_v56 = vadd.f32 %v1742_v34, %v1550_v49  ;;  %2124 = vmatprep.mubr.bf16.mxu0 %v1848_v31  ;;  %v1814_v54 = vmax.f32 %v1741_v9, 0.0 }
 0x282   :  { %v1744_v51 = vpop.f32.mrf.mxu1  ;;  %2125 = vmatmul.mubr.bf16.gmra.mxu0 %v1847_v30 }
 0x283   :  { %v1745_v33 = vadd.f32 %v1744_v51, %v1552_v10  ;;  %v1815_v21 = vmax.f32 %v1743_v56, 0.0 }
 0x284   :  { %v1748_v7 = vpop.f32.mrf.mxu1 }
 0x285   :  { %v1816_v25 = vmax.f32 %v1745_v33, 0.0  ;;  %v1849_v42 = vpack.c.bf16 %v1815_v21, %v1813_v3  ;;  %v1749_v38 = vadd.f32 %v1748_v7, %v1556_v28 }
 0x286   :  { %v1750_v0 = vpop.f32.mrf.mxu1 }
 0x287   :  { %v1850_v50 = vpack.c.bf16 %v1816_v25, %v1814_v54  ;;  %v1751_v16 = vadd.f32 %v1750_v0, %v1558_v55  ;;  %v1817_v58 = vmax.f32 %v1749_v38, 0.0 }
 0x288   :  { %v1752_v37 = vpop.f32.mrf.mxu1 }
 0x289   :  { %v1753_v35 = vadd.f32 %v1752_v37, %v1560_v43  ;;  %2132 = vmatprep.mubr.bf16.mxu0 %v1850_v50  ;;  %v1818_v59 = vmax.f32 %v1751_v16, 0.0 }
 0x28a   :  { %v1754_v60 = vpop.f32.mrf.mxu1  ;;  %2133 = vmatmul.mubr.bf16.gmra.mxu0 %v1849_v42 }
 0x28b   :  { %v1755_v39 = vadd.f32 %v1754_v60, %v1562_v63  ;;  %v1819_v61 = vmax.f32 %v1753_v35, 0.0 }
 0x28d   :  { %v1820_v19 = vmax.f32 %v1755_v39, 0.0  ;;  %v1851_v57 = vpack.c.bf16 %v1819_v61, %v1817_v58 }
 0x28f   :  { %v1852_v27 = vpack.c.bf16 %v1820_v19, %v1818_v59 }
 0x291   :  { %2140 = vmatprep.mubr.bf16.mxu0 %v1852_v27 }
 0x292   :  { %2141 = vmatmul.mubr.bf16.gmra.mxu0 %v1851_v57 }
 0x2da   :  { %v2332_v46 = vpop.f32.mrf.mxu0 }
 0x2dc   :  { %v2333_v13 = vpop.f32.mrf.mxu0 }
 0x2dd   :  { %v2334_v29 = vadd.f32 %v2333_v13, %v2332_v46 }
 0x2de   :  { %v2335_v4 = vpop.f32.mrf.mxu0 }
 0x2df   :  { %v2023_v5 = vadd.f32 %v2334_v29, %v3359_v44 }
 0x2e0   :  { %v2336_v14 = vpop.f32.mrf.mxu0 }
 0x2e1   :  { %2149 = vst [vmem:[%s3496_s7] sm:$0xff] %v2023_v5  ;;  %v2337_v52 = vadd.f32 %v2336_v14, %v2335_v4 }
 0x2e2   :  { %v2338_v8 = vpop.f32.mrf.mxu0 }
 0x2e3   :  { %v2026_v18 = vadd.f32 %v2337_v52, %v3359_v44 }
 0x2e4   :  { %v2339_v47 = vpop.f32.mrf.mxu0 }
 0x2e5   :  { %2150 = vst [vmem:[%s3496_s7 + $0x8] sm:$0xff] %v2026_v18  ;;  %v2340_v22 = vadd.f32 %v2339_v47, %v2338_v8 }
 0x2e6   :  { %v2341_v6 = vpop.f32.mrf.mxu0 }
 0x2e7   :  { %v2031_v1 = vadd.f32 %v2340_v22, %v3359_v44 }
 0x2e8   :  { %v2342_v11 = vpop.f32.mrf.mxu0 }
 0x2e9   :  { %2151 = vst [vmem:[%s3496_s7 + $0x10] sm:$0xff] %v2031_v1  ;;  %v2343_v32 = vadd.f32 %v2342_v11, %v2341_v6 }
 0x2ea   :  { %v2344_v53 = vpop.f32.mrf.mxu0 }
 0x2eb   :  { %v2034_v15 = vadd.f32 %v2343_v32, %v3359_v44 }
 0x2ec   :  { %v2345_v41 = vpop.f32.mrf.mxu0 }
 0x2ed   :  { %2152 = vst [vmem:[%s3496_s7 + $0x18] sm:$0xff] %v2034_v15  ;;  %v2346_v40 = vadd.f32 %v2345_v41, %v2344_v53 }
 0x2ee   :  { %v2347_v23 = vpop.f32.mrf.mxu0 }
 0x2ef   :  { %v2039_v62 = vadd.f32 %v2346_v40, %v3359_v44 }
 0x2f0   :  { %v2348_v12 = vpop.f32.mrf.mxu0 }
 0x2f1   :  { %2153 = vst [vmem:[%s3496_s7 + $0x20] sm:$0xff] %v2039_v62  ;;  %v2349_v26 = vadd.f32 %v2348_v12, %v2347_v23 }
 0x2f2   :  { %v2350_v20 = vpop.f32.mrf.mxu0 }
 0x2f3   :  { %v2042_v45 = vadd.f32 %v2349_v26, %v3359_v44 }
 0x2f4   :  { %v2351_v36 = vpop.f32.mrf.mxu0 }
 0x2f5   :  { %2154 = vst [vmem:[%s3496_s7 + $0x28] sm:$0xff] %v2042_v45  ;;  %v2352_v49 = vadd.f32 %v2351_v36, %v2350_v20 }
 0x2f6   :  { %v2353_v31 = vpop.f32.mrf.mxu0 }
 0x2f7   :  { %v2047_v17 = vadd.f32 %v2352_v49, %v3359_v44 }
 0x2f8   :  { %v2354_v30 = vpop.f32.mrf.mxu0 }
 0x2f9   :  { %2155 = vst [vmem:[%s3496_s7 + $0x30] sm:$0xff] %v2047_v17  ;;  %v2355_v34 = vadd.f32 %v2354_v30, %v2353_v31 }
 0x2fa   :  { %v2356_v10 = vpop.f32.mrf.mxu0 }
 0x2fb   :  { %v2050_v9 = vadd.f32 %v2355_v34, %v3359_v44 }
 0x2fc   :  { %v2357_v56 = vpop.f32.mrf.mxu0 }
 0x2fd   :  { %2156 = vst [vmem:[%s3496_s7 + $0x38] sm:$0xff] %v2050_v9  ;;  %v2358_v48 = vadd.f32 %v2357_v56, %v2356_v10 }
 0x2fe   :  { %v2359_v24 = vpop.f32.mrf.mxu0 }
 0x2ff   :  { %v2055_v51 = vadd.f32 %v2358_v48, %v3359_v44 }
 0x300   :  { %v2360_v33 = vpop.f32.mrf.mxu0 }
 0x301   :  { %2157 = vst [vmem:[%s3496_s7 + $0x40] sm:$0xff] %v2055_v51  ;;  %v2361_v21 = vadd.f32 %v2360_v33, %v2359_v24 }
 0x302   :  { %v2362_v7 = vpop.f32.mrf.mxu0 }
 0x303   :  { %v2058_v54 = vadd.f32 %v2361_v21, %v3359_v44 }
 0x304   :  { %v2363_v25 = vpop.f32.mrf.mxu0 }
 0x305   :  { %2158 = vst [vmem:[%s3496_s7 + $0x48] sm:$0xff] %v2058_v54  ;;  %v2364_v2 = vadd.f32 %v2363_v25, %v2362_v7 }
 0x306   :  { %v2365_v3 = vpop.f32.mrf.mxu0 }
 0x307   :  { %v2063_v0 = vadd.f32 %v2364_v2, %v3359_v44 }
 0x308   :  { %v2366_v55 = vpop.f32.mrf.mxu0 }
 0x309   :  { %2159 = vst [vmem:[%s3496_s7 + $0x50] sm:$0xff] %v2063_v0  ;;  %v2367_v43 = vadd.f32 %v2366_v55, %v2365_v3 }
 0x30a   :  { %v2368_v50 = vpop.f32.mrf.mxu0 }
 0x30b   :  { %v2066_v28 = vadd.f32 %v2367_v43, %v3359_v44 }
 0x30c   :  { %v2369_v42 = vpop.f32.mrf.mxu0 }
 0x30d   :  { %2160 = vst [vmem:[%s3496_s7 + $0x58] sm:$0xff] %v2066_v28  ;;  %v2370_v37 = vadd.f32 %v2369_v42, %v2368_v50 }
 0x30e   :  { %v2371_v63 = vpop.f32.mrf.mxu0 }
 0x30f   :  { %v2071_v16 = vadd.f32 %v2370_v37, %v3359_v44 }
 0x310   :  { %v2372_v35 = vpop.f32.mrf.mxu0 }
 0x311   :  { %2161 = vst [vmem:[%s3496_s7 + $0x60] sm:$0xff] %v2071_v16  ;;  %v2373_v38 = vadd.f32 %v2372_v35, %v2371_v63 }
 0x312   :  { %v2374_v60 = vpop.f32.mrf.mxu0 }
 0x313   :  { %v2074_v39 = vadd.f32 %v2373_v38, %v3359_v44 }
 0x314   :  { %v2375_v61 = vpop.f32.mrf.mxu0 }
 0x315   :  { %2162 = vst [vmem:[%s3496_s7 + $0x68] sm:$0xff] %v2074_v39  ;;  %v2376_v59 = vadd.f32 %v2375_v61, %v2374_v60 }
 0x316   :  { %v2377_v19 = vpop.f32.mrf.mxu0 }
 0x317   :  { %v2079_v58 = vadd.f32 %v2376_v59, %v3359_v44 }
 0x318   :  { %v2378_v27 = vpop.f32.mrf.mxu0 }
 0x319   :  { %2163 = vst [vmem:[%s3496_s7 + $0x70] sm:$0xff] %v2079_v58  ;;  %v2379_v57 = vadd.f32 %v2378_v27, %v2377_v19 }
 0x31a   :  { %v2380_v46 = vpop.f32.mrf.mxu0 }
 0x31b   :  { %v2082_v13 = vadd.f32 %v2379_v57, %v3359_v44 }
 0x31c   :  { %v2381_v29 = vpop.f32.mrf.mxu0 }
 0x31d   :  { %2164 = vst [vmem:[%s3496_s7 + $0x78] sm:$0xff] %v2082_v13  ;;  %v2382_v4 = vadd.f32 %v2381_v29, %v2380_v46 }
 0x31e   :  { %v2383_v5 = vpop.f32.mrf.mxu0 }
 0x31f   :  { %v2087_v14 = vadd.f32 %v2382_v4, %v3359_v44 }
 0x320   :  { %v2384_v52 = vpop.f32.mrf.mxu0 }
 0x321   :  { %2165 = vst [vmem:[%s3496_s7 + $0x80] sm:$0xff] %v2087_v14  ;;  %v2385_v8 = vadd.f32 %v2384_v52, %v2383_v5 }
 0x322   :  { %v2386_v18 = vpop.f32.mrf.mxu0 }
 0x323   :  { %v2090_v47 = vadd.f32 %v2385_v8, %v3359_v44 }
 0x324   :  { %v2387_v22 = vpop.f32.mrf.mxu0 }
 0x325   :  { %2166 = vst [vmem:[%s3496_s7 + $0x88] sm:$0xff] %v2090_v47  ;;  %v2388_v6 = vadd.f32 %v2387_v22, %v2386_v18 }
 0x326   :  { %v2389_v1 = vpop.f32.mrf.mxu0 }
 0x327   :  { %v2095_v11 = vadd.f32 %v2388_v6, %v3359_v44 }
 0x328   :  { %v2390_v32 = vpop.f32.mrf.mxu0 }
 0x329   :  { %2167 = vst [vmem:[%s3496_s7 + $0x90] sm:$0xff] %v2095_v11  ;;  %v2391_v53 = vadd.f32 %v2390_v32, %v2389_v1 }
 0x32a   :  { %v2392_v15 = vpop.f32.mrf.mxu0 }
 0x32b   :  { %v2098_v41 = vadd.f32 %v2391_v53, %v3359_v44 }
 0x32c   :  { %v2393_v40 = vpop.f32.mrf.mxu0 }
 0x32d   :  { %2168 = vst [vmem:[%s3496_s7 + $0x98] sm:$0xff] %v2098_v41  ;;  %v2394_v23 = vadd.f32 %v2393_v40, %v2392_v15 }
 0x32e   :  { %v2395_v62 = vpop.f32.mrf.mxu0 }
 0x32f   :  { %v2103_v12 = vadd.f32 %v2394_v23, %v3359_v44 }
 0x330   :  { %v2396_v26 = vpop.f32.mrf.mxu0 }
 0x331   :  { %2169 = vst [vmem:[%s3496_s7 + $0xa0] sm:$0xff] %v2103_v12  ;;  %v2397_v20 = vadd.f32 %v2396_v26, %v2395_v62 }
 0x332   :  { %v2398_v45 = vpop.f32.mrf.mxu0 }
 0x333   :  { %v2106_v36 = vadd.f32 %v2397_v20, %v3359_v44 }
 0x334   :  { %v2399_v49 = vpop.f32.mrf.mxu0 }
 0x335   :  { %2170 = vst [vmem:[%s3496_s7 + $0xa8] sm:$0xff] %v2106_v36  ;;  %v2400_v31 = vadd.f32 %v2399_v49, %v2398_v45 }
 0x336   :  { %v2401_v17 = vpop.f32.mrf.mxu0 }
 0x337   :  { %v2111_v30 = vadd.f32 %v2400_v31, %v3359_v44 }
 0x338   :  { %v2402_v34 = vpop.f32.mrf.mxu0 }
 0x339   :  { %2171 = vst [vmem:[%s3496_s7 + $0xb0] sm:$0xff] %v2111_v30  ;;  %v2403_v10 = vadd.f32 %v2402_v34, %v2401_v17 }
 0x33a   :  { %v2404_v9 = vpop.f32.mrf.mxu0 }
 0x33b   :  { %v2114_v56 = vadd.f32 %v2403_v10, %v3359_v44 }
 0x33c   :  { %v2405_v48 = vpop.f32.mrf.mxu0 }
 0x33d   :  { %2172 = vst [vmem:[%s3496_s7 + $0xb8] sm:$0xff] %v2114_v56  ;;  %v2406_v24 = vadd.f32 %v2405_v48, %v2404_v9 }
 0x33e   :  { %v2407_v51 = vpop.f32.mrf.mxu0 }
 0x33f   :  { %v2119_v33 = vadd.f32 %v2406_v24, %v3359_v44 }
 0x340   :  { %v2408_v21 = vpop.f32.mrf.mxu0 }
 0x341   :  { %2173 = vst [vmem:[%s3496_s7 + $0xc0] sm:$0xff] %v2119_v33  ;;  %v2409_v7 = vadd.f32 %v2408_v21, %v2407_v51 }
 0x342   :  { %v2410_v54 = vpop.f32.mrf.mxu0 }
 0x343   :  { %v2122_v25 = vadd.f32 %v2409_v7, %v3359_v44 }
 0x344   :  { %v2411_v2 = vpop.f32.mrf.mxu0 }
 0x345   :  { %2174 = vst [vmem:[%s3496_s7 + $0xc8] sm:$0xff] %v2122_v25  ;;  %v2412_v3 = vadd.f32 %v2411_v2, %v2410_v54 }
 0x346   :  { %v2413_v0 = vpop.f32.mrf.mxu0 }
 0x347   :  { %v2127_v55 = vadd.f32 %v2412_v3, %v3359_v44 }
 0x348   :  { %v2414_v43 = vpop.f32.mrf.mxu0 }
 0x349   :  { %2175 = vst [vmem:[%s3496_s7 + $0xd0] sm:$0xff] %v2127_v55  ;;  %v2415_v50 = vadd.f32 %v2414_v43, %v2413_v0 }
 0x34a   :  { %v2416_v28 = vpop.f32.mrf.mxu0 }
 0x34b   :  { %v2130_v42 = vadd.f32 %v2415_v50, %v3359_v44 }
 0x34c   :  { %v2417_v37 = vpop.f32.mrf.mxu0 }
 0x34d   :  { %2176 = vst [vmem:[%s3496_s7 + $0xd8] sm:$0xff] %v2130_v42  ;;  %v2418_v63 = vadd.f32 %v2417_v37, %v2416_v28 }
 0x34e   :  { %v2419_v16 = vpop.f32.mrf.mxu0 }
 0x34f   :  { %v2135_v35 = vadd.f32 %v2418_v63, %v3359_v44 }
 0x350   :  { %v2420_v38 = vpop.f32.mrf.mxu0 }
 0x351   :  { %2177 = vst [vmem:[%s3496_s7 + $0xe0] sm:$0xff] %v2135_v35  ;;  %v2421_v60 = vadd.f32 %v2420_v38, %v2419_v16 }
 0x352   :  { %v2422_v39 = vpop.f32.mrf.mxu0 }
 0x353   :  { %v2138_v61 = vadd.f32 %v2421_v60, %v3359_v44 }
 0x354   :  { %v2423_v59 = vpop.f32.mrf.mxu0 }
 0x355   :  { %2178 = vst [vmem:[%s3496_s7 + $0xe8] sm:$0xff] %v2138_v61  ;;  %v2424_v19 = vadd.f32 %v2423_v59, %v2422_v39 }
 0x356   :  { %v2425_v58 = vpop.f32.mrf.mxu0 }
 0x357   :  { %v2143_v27 = vadd.f32 %v2424_v19, %v3359_v44 }
 0x358   :  { %v2426_v57 = vpop.f32.mrf.mxu0 }
 0x359   :  { %2179 = vst [vmem:[%s3496_s7 + $0xf0] sm:$0xff] %v2143_v27  ;;  %v2427_v46 = vadd.f32 %v2426_v57, %v2425_v58 }
 0x35b   :  { %v2146_v13 = vadd.f32 %v2427_v46, %v3359_v44 }
 0x35d   :  { %2180 = vst [vmem:[%s3496_s7 + $0xf8] sm:$0xff] %v2146_v13 }
 0x35e   :  { %2185 = vsyncpa [#allocation3], 1 }
 0x35f   :  { %2186 = vsyncpa [#allocation5], 1 }

</bundles_post_ra>
